<compile_context>
chip_gen: v6e
topology: v6e:2x2x1
jax: 0.10.0
libtpu: 0.0.40
codegen_flags: <defaults>
</compile_context>

<pallas_src>
import jax
import jax.numpy as jnp
from jax import lax
from jax.experimental import pallas as pl
from jax.experimental.pallas import tpu as pltpu


def _layernorm(x, w, b, eps=1e-5):
    # Two-pass variance: matches the reference and avoids catastrophic
    # cancellation on post-residual activations.
    mu = jnp.mean(x, axis=-1, keepdims=True)
    xc = x - mu
    var = jnp.mean(xc * xc, axis=-1, keepdims=True)
    return xc * lax.rsqrt(var + eps) * w + b


def make_block_kernel(emb_size, num_head, seq_len, key_tile, compute_dtype,
                      fold_recip_into_v):
    E = emb_size
    H = num_head
    hd = E // H
    N = seq_len
    TK = key_tile
    n_key_tiles = N // TK
    cdt = compute_dtype

    def kernel(x_ref, lnw_ref, lnb_ref,
               wqkv_ref, bqkv_ref,
               w1_ref, b1_ref, w2_ref, b2_ref,
               o_ref,
               res_scr, xn2_scr):
        t = pl.program_id(1)

        # ----- grid step t == 0: attention sublayer (+ LN feeding the FF) ---
        @pl.when(t == 0)
        def _attention():
            x = x_ref[0]                                   # (N, E) f32
            lnw = lnw_ref[...]
            lnb = lnb_ref[...]
            xn = _layernorm(x, lnw, lnb)

            # Fused QKV projection; 1/sqrt(num_head) pre-folded into wq/bq.
            qkv = (jnp.dot(xn.astype(cdt), wqkv_ref[...],
                           preferred_element_type=jnp.float32)
                   + bqkv_ref[...])                        # (N, 3E) f32

            # Lane-dense residual slab: each head's output goes straight into
            # its own column slice (no per-head concat / 'hnd->nhd' repack).
            res_scr[...] = x

            for h in range(H):                             # static unroll
                lo = h * hd
                q_h = qkv[:, lo:lo + hd].astype(cdt)       # (N, hd)
                acc_h = jnp.zeros((N, hd), jnp.float32)

                # Key-axis tiling: the softmax is over the QUERY axis so every
                # key column is normalized independently -> plain accumulation
                # over key blocks, no online-softmax state.
                # TODO(synk): switch this static unroll to lax.fori_loop for
                # very long sequences (many key tiles).
                for kt in range(n_key_tiles):
                    ks = kt * TK
                    k_blk = qkv[ks:ks + TK, E + lo:E + lo + hd]          # (TK, hd)
                    v_blk = qkv[ks:ks + TK, 2 * E + lo:2 * E + lo + hd]  # (TK, hd)

                    if fold_recip_into_v:
                        # Scores key-major so the per-key-column softmax stats
                        # are last-dim (lane) reductions and the reciprocal is
                        # folded into V: a (TK, hd) multiply instead of an
                        # (N, TK) one.
                        s = lax.dot_general(
                            k_blk.astype(cdt), q_h,
                            (((1,), (1,)), ((), ())),
                            preferred_element_type=jnp.float32)          # (TK, N)
                        s = s - jnp.max(s, axis=1, keepdims=True)
                        e = jnp.exp(s)
                        denom = jnp.sum(e, axis=1, keepdims=True)        # (TK, 1)
                        v_sc = (v_blk * pl.reciprocal(denom, approx=True)
                                ).astype(cdt)
                        # out += e^T @ v_sc (contract the key axis, dim 0/0).
                        acc_h = acc_h + lax.dot_general(
                            e.astype(cdt), v_sc,
                            (((0,), (0,)), ((), ())),
                            preferred_element_type=jnp.float32)          # (N, hd)
                    else:
                        s = lax.dot_general(
                            q_h, k_blk.astype(cdt),
                            (((1,), (1,)), ((), ())),
                            preferred_element_type=jnp.float32)          # (N, TK)
                        s = s - jnp.max(s, axis=0, keepdims=True)
                        e = jnp.exp(s)
                        denom = jnp.sum(e, axis=0, keepdims=True)        # (1, TK)
                        p = (e * pl.reciprocal(denom, approx=True)).astype(cdt)
                        acc_h = acc_h + jnp.dot(
                            p, v_blk.astype(cdt),
                            preferred_element_type=jnp.float32)

                res_scr[:, lo:lo + hd] += acc_h

            x1 = res_scr[...]                              # x + attention
            # Shared LayerNorm (same params) feeding the feed-forward.
            xn2_scr[...] = _layernorm(x1, lnw, lnb)
            # FF accumulator starts at residual + final bias (added once).
            res_scr[...] = x1 + b2_ref[...]

        # ----- every grid step: one hidden-dim block of the feed-forward ----
        #   y += (LN(x1) @ w1[:, blk] + b1[blk]) @ w2[blk, :]
        h1 = (jnp.dot(xn2_scr[...].astype(cdt), w1_ref[...],
                      preferred_element_type=jnp.float32)
              + b1_ref[...])                               # (N, T4)
        res_scr[...] += jnp.dot(h1.astype(cdt), w2_ref[...],
                                preferred_element_type=jnp.float32)

        @pl.when(t == pl.num_programs(1) - 1)
        def _finalize():
            o_ref[0] = res_scr[...].astype(o_ref.dtype)

    return kernel


def block_forward(x, params, num_head, *, compute_dtype=jnp.float32):
    B, N, E = x.shape
    assert E % num_head == 0
    head_dim = E // num_head
    scale = 1.0 / (float(num_head) ** 0.5)    # PyTorch: / num_head ** 0.5

    # Fused QKV weights with the attention scale folded into wq / bq.  The big
    # matmul operands are stored in compute_dtype (bf16 halves DMA bytes and
    # gives 2-4x MXU throughput); biases stay f32 (added after f32 accumulate).
    wqkv = jnp.concatenate(
        [params["wq"] * scale, params["wk"], params["wv"]],
        axis=1).astype(compute_dtype)                       # (E, 3E)
    bqkv = jnp.concatenate(
        [params["bq"] * scale, params["bk"], params["bv"]], axis=1)  # (1, 3E)
    w1 = params["w1"].astype(compute_dtype)                 # (E, 4E)
    w2 = params["w2"].astype(compute_dtype)                 # (4E, E)

    hidden = 4 * E
    t4 = hidden if hidden <= 512 else 512      # FF hidden (reduction) tile
    tk = N if N <= 512 else 512                # attention key tile
    assert hidden % t4 == 0 and N % tk == 0
    # (8,128) tiling rule: blocks must be full-extent or (8,128)-aligned.
    assert t4 == hidden or (t4 % 128 == 0 and E % 8 == 0)
    n_hidden_tiles = hidden // t4

    cbytes = jnp.dtype(compute_dtype).itemsize
    # Per-step VMEM working set (bytes); generous estimate, then headroom.
    est = (2 * 2 * N * E * 4                       # x / out blocks (2-buffered)
           + (3 * E * E) * cbytes + 3 * E * 4      # fused QKV weight + bias
           + 2 * (E * t4 + t4 * E) * cbytes + 2 * t4 * 4   # streamed w1/w2/b1
           + 2 * N * E * 4                         # residual + LN scratch slabs
           + 3 * N * E * 4                         # qkv activation
           + N * t4 * 4                            # ff hidden block
           + 2 * N * tk * 4                        # score / exp tiles
           + 2 * E * 4)
    vmem_limit = int(min(100 * 2 ** 20, max(32 * 2 ** 20, 2 * est)))

    cost = pl.CostEstimate(
        flops=int(B * (2 * N * E * 3 * E
                       + 4 * num_head * N * N * head_dim
                       + 4 * N * E * hidden
                       + 16 * N * E)),
        transcendentals=int(B * (num_head * N * N + num_head * N + 2 * N)),
        bytes_accessed=int(2 * B * N * E * 4
                           + (3 * E * E + 2 * E * hidden) * cbytes + 16 * E),
    )

    args = (x, params["ln_w"], params["ln_b"], wqkv, bqkv,
            w1, params["b1"], w2, params["b2"])

    def run(optimized):
        kernel = make_block_kernel(E, num_head, N, tk, compute_dtype,
                                   fold_recip_into_v=optimized)
        const_kwargs = {"pipeline_mode": pl.Buffered(1)} if optimized else {}

        def const_spec(shape):
            # Grid-invariant operand (weights / biases): fetched once, so a
            # single VMEM buffer suffices (no double buffering).
            return pl.BlockSpec(shape, lambda b, t: (0, 0), **const_kwargs)

        in_specs = [
            pl.BlockSpec((1, N, E), lambda b, t: (b, 0, 0)),        # x
            const_spec((1, E)), const_spec((1, E)),                 # LN w / b
            const_spec((E, 3 * E)), const_spec((1, 3 * E)),         # fused QKV
            pl.BlockSpec((E, t4), lambda b, t: (0, t)),             # w1 block
            pl.BlockSpec((1, t4), lambda b, t: (0, t)),             # b1 block
            pl.BlockSpec((t4, E), lambda b, t: (t, 0)),             # w2 block
            const_spec((1, E)),                                     # b2
        ]

        return pl.pallas_call(
            kernel,
            out_shape=jax.ShapeDtypeStruct((B, N, E), x.dtype),
            grid_spec=pltpu.PrefetchScalarGridSpec(
                num_scalar_prefetch=0,
                grid=(B, n_hidden_tiles),
                in_specs=in_specs,
                out_specs=pl.BlockSpec((1, N, E), lambda b, t: (b, 0, 0)),
                scratch_shapes=[pltpu.VMEM((N, E), jnp.float32),   # residual/acc
                                pltpu.VMEM((N, E), jnp.float32)],  # LN(x1)
            ),
            compiler_params=pltpu.CompilerParams(
                # Batch axis is independent (megacore split on v7x); the FF
                # hidden axis is a reduction into the resident output block.
                dimension_semantics=("parallel", "arbitrary"),
                vmem_limit_bytes=vmem_limit),
            cost_estimate=cost,
        )(*args)

    try:
        return run(optimized=True)
    except Exception:
        # TODO(synk): pl.Buffered(1) / transposed-lhs dot_general are not
        # available on every jax/Mosaic version; fall back to the baseline
        # (double-buffered weights, reciprocal applied to the prob tile).
        return run(optimized=False)


def ref_block(x, p, H):
    """Pure-JAX reference mirroring the PyTorch forward exactly."""
    def ln(t):
        mu = t.mean(-1, keepdims=True)
        var = ((t - mu) ** 2).mean(-1, keepdims=True)
        return (t - mu) / jnp.sqrt(var + 1e-5) * p["ln_w"][0] + p["ln_b"][0]

    B, N, E = x.shape
    hd = E // H
    xn = ln(x)
    q = xn @ p["wq"] + p["bq"][0]
    k = xn @ p["wk"] + p["bk"][0]
    v = xn @ p["wv"] + p["bv"][0]

    def split(t):  # 'b n (h e) -> b h n e'
        return t.reshape(B, N, H, hd).transpose(0, 2, 1, 3)

    q, k, v = split(q), split(k), split(v)
    wei = jnp.einsum("bhqe,bhke->bhqk", q, k) / (float(H) ** 0.5)
    wei = jax.nn.softmax(wei, axis=2)          # dim=2 == query axis
    out = jnp.einsum("bhqk,bhke->bhqe", wei, v)
    att = out.transpose(0, 2, 1, 3).reshape(B, N, E)
    x1 = x + att
    xn2 = ln(x1)
    y = (xn2 @ p["w1"] + p["b1"][0]) @ p["w2"] + p["b2"][0]
    return x1 + y


if __name__ == "__main__":
    B, N, E, H = 2, 8, 32, 4     # batch, seq, emb_size, num_head
    key = jax.random.PRNGKey(0)
    ks = jax.random.split(key, 13)

    s = 0.02
    params = {
        "ln_w": 1.0 + 0.1 * jax.random.normal(ks[0], (1, E), jnp.float32),
        "ln_b": 0.1 * jax.random.normal(ks[1], (1, E), jnp.float32),
        "wq": s * jax.random.normal(ks[2], (E, E), jnp.float32),
        "bq": s * jax.random.normal(ks[3], (1, E), jnp.float32),
        "wk": s * jax.random.normal(ks[4], (E, E), jnp.float32),
        "bk": s * jax.random.normal(ks[5], (1, E), jnp.float32),
        "wv": s * jax.random.normal(ks[6], (E, E), jnp.float32),
        "bv": s * jax.random.normal(ks[7], (1, E), jnp.float32),
        "w1": s * jax.random.normal(ks[8], (E, 4 * E), jnp.float32),
        "b1": s * jax.random.normal(ks[9], (1, 4 * E), jnp.float32),
        "w2": s * jax.random.normal(ks[10], (4 * E, E), jnp.float32),
        "b2": s * jax.random.normal(ks[11], (1, E), jnp.float32),
    }
    x = jax.random.normal(ks[12], (B, N, E), jnp.float32)

    ref = ref_block(x, params, H)

    # f32 MXU path: tight check (only the approx EUP reciprocal differs).
    out = block_forward(x, params, H, compute_dtype=jnp.float32)
    jax.block_until_ready(out)
    assert out.shape == (B, N, E)
    assert jnp.allclose(out, ref, atol=2e-3, rtol=2e-3), "f32 mismatch vs ref"

    # bf16 MXU inputs with f32 accumulation (2-4x MXU throughput, half the
    # weight DMA bytes) -- validated with a correspondingly looser tolerance.
    out_bf16 = block_forward(x, params, H, compute_dtype=jnp.bfloat16)
    jax.block_until_ready(out_bf16)
    assert jnp.allclose(out_bf16, ref, atol=3e-2, rtol=3e-2), "bf16 mismatch"

    print("KERNEL_OK")
</pallas_src>

<mosaic_0001>
module attributes {stable_mosaic.version = 11 : i64} {
  func.func @kernel(%arg0: i32, %arg1: i32, %arg2: memref<1x8x32xf32, #tpu.memory_space<vmem>>, %arg3: memref<1x32xf32, #tpu.memory_space<vmem>>, %arg4: memref<1x32xf32, #tpu.memory_space<vmem>>, %arg5: memref<32x96xf32, #tpu.memory_space<vmem>>, %arg6: memref<1x96xf32, #tpu.memory_space<vmem>>, %arg7: memref<32x128xf32, #tpu.memory_space<vmem>>, %arg8: memref<1x128xf32, #tpu.memory_space<vmem>>, %arg9: memref<128x32xf32, #tpu.memory_space<vmem>>, %arg10: memref<1x32xf32, #tpu.memory_space<vmem>>, %arg11: memref<1x8x32xf32, #tpu.memory_space<vmem>>, %arg12: memref<8x32xf32, #tpu.memory_space<vmem>>, %arg13: memref<8x32xf32, #tpu.memory_space<vmem>>) attributes {dimension_semantics = [#tpu.dimension_semantics<parallel>, #tpu.dimension_semantics<arbitrary>], iteration_bounds = array<i64: 2, 1>, scalar_prefetch = 0 : i64, scratch_operands = 2 : i64, tpu.core_type = #tpu.core_type<tc>, window_params = [{transform_indices = @transform_0, window_bounds = array<i64: 1, 8, 32>}, {pipeline_mode = #tpu.pipeline_mode<synchronous>, transform_indices = @transform_1, window_bounds = array<i64: 1, 32>}, {pipeline_mode = #tpu.pipeline_mode<synchronous>, transform_indices = @transform_2, window_bounds = array<i64: 1, 32>}, {pipeline_mode = #tpu.pipeline_mode<synchronous>, transform_indices = @transform_3, window_bounds = array<i64: 32, 96>}, {pipeline_mode = #tpu.pipeline_mode<synchronous>, transform_indices = @transform_4, window_bounds = array<i64: 1, 96>}, {transform_indices = @transform_5, window_bounds = array<i64: 32, 128>}, {transform_indices = @transform_6, window_bounds = array<i64: 1, 128>}, {transform_indices = @transform_7, window_bounds = array<i64: 128, 32>}, {pipeline_mode = #tpu.pipeline_mode<synchronous>, transform_indices = @transform_8, window_bounds = array<i64: 1, 32>}, {transform_indices = @transform_9, window_bounds = array<i64: 1, 8, 32>}]} {
    %c0_i32 = arith.constant 0 : i32
    %0 = arith.cmpi eq, %arg1, %c0_i32 : i32
    %1 = arith.extui %0 : i1 to i32
    %c0_i32_0 = arith.constant 0 : i32
    %2 = arith.cmpi ne, %1, %c0_i32_0 : i32
    scf.if %2 {
      %c0_15 = arith.constant 0 : index
      %c0_16 = arith.constant 0 : index
      %c0_17 = arith.constant 0 : index
      %17 = vector.load %arg2[%c0_15, %c0_16, %c0_17] : memref<1x8x32xf32, #tpu.memory_space<vmem>>, vector<1x8x32xf32>
      %18 = vector.shape_cast %17 : vector<1x8x32xf32> to vector<8x32xf32>
      %c0_18 = arith.constant 0 : index
      %c0_19 = arith.constant 0 : index
      %19 = vector.load %arg3[%c0_18, %c0_19] : memref<1x32xf32, #tpu.memory_space<vmem>>, vector<1x32xf32>
      %c0_20 = arith.constant 0 : index
      %c0_21 = arith.constant 0 : index
      %20 = vector.load %arg4[%c0_20, %c0_21] : memref<1x32xf32, #tpu.memory_space<vmem>>, vector<1x32xf32>
      %cst_22 = arith.constant dense<0.000000e+00> : vector<8xf32>
      %21 = vector.multi_reduction <add>, %18, %cst_22 [1] : vector<8x32xf32> to vector<8xf32>
      %22 = vector.shape_cast %21 : vector<8xf32> to vector<8x1xf32>
      %cst_23 = arith.constant 3.200000e+01 : f32
      %23 = vector.broadcast %cst_23 : f32 to vector<8x1xf32>
      %24 = arith.divf %22, %23 : vector<8x1xf32>
      %25 = vector.broadcast %24 : vector<8x1xf32> to vector<8x32xf32>
      %26 = arith.subf %18, %25 : vector<8x32xf32>
      %27 = arith.mulf %26, %26 : vector<8x32xf32>
      %cst_24 = arith.constant dense<0.000000e+00> : vector<8xf32>
      %28 = vector.multi_reduction <add>, %27, %cst_24 [1] : vector<8x32xf32> to vector<8xf32>
      %29 = vector.shape_cast %28 : vector<8xf32> to vector<8x1xf32>
      %cst_25 = arith.constant 3.200000e+01 : f32
      %30 = vector.broadcast %cst_25 : f32 to vector<8x1xf32>
      %31 = arith.divf %29, %30 : vector<8x1xf32>
      %cst_26 = arith.constant 9.99999974E-6 : f32
      %32 = vector.broadcast %cst_26 : f32 to vector<8x1xf32>
      %33 = arith.addf %31, %32 : vector<8x1xf32>
      %34 = math.rsqrt %33 : vector<8x1xf32>
      %35 = vector.broadcast %34 : vector<8x1xf32> to vector<8x32xf32>
      %36 = arith.mulf %26, %35 : vector<8x32xf32>
      %37 = vector.broadcast %19 : vector<1x32xf32> to vector<8x32xf32>
      %38 = arith.mulf %36, %37 : vector<8x32xf32>
      %39 = vector.broadcast %20 : vector<1x32xf32> to vector<8x32xf32>
      %40 = arith.addf %38, %39 : vector<8x32xf32>
      %c0_27 = arith.constant 0 : index
      %c0_28 = arith.constant 0 : index
      %41 = vector.load %arg5[%c0_27, %c0_28] : memref<32x96xf32, #tpu.memory_space<vmem>>, vector<32x96xf32>
      %cst_29 = arith.constant dense<0.000000e+00> : vector<8x96xf32>
      %42 = tpu.matmul %40, %41, %cst_29 {dimension_numbers = #tpu.dot_dimension_numbers<[1], [0], [0], [1], [0, 0, 1, 1], [], []>} : vector<8x32xf32>, vector<32x96xf32>, vector<8x96xf32> -> vector<8x96xf32>
      %c0_30 = arith.constant 0 : index
      %c0_31 = arith.constant 0 : index
      %43 = vector.load %arg6[%c0_30, %c0_31] : memref<1x96xf32, #tpu.memory_space<vmem>>, vector<1x96xf32>
      %44 = vector.broadcast %43 : vector<1x96xf32> to vector<8x96xf32>
      %45 = arith.addf %42, %44 : vector<8x96xf32>
      %c0_32 = arith.constant 0 : index
      %c0_33 = arith.constant 0 : index
      %46 = vector.load %arg12[%c0_32, %c0_33] : memref<8x32xf32, #tpu.memory_space<vmem>>, vector<8x32xf32>
      tpu.vector_store %arg12[%c0_32, %c0_33], %18 {strides = array<i32>} : memref<8x32xf32, #tpu.memory_space<vmem>>, vector<8x32xf32>,
      %47 = vector.extract_strided_slice %45 {offsets = [0, 0], sizes = [8, 8], strides = [1, 1]} : vector<8x96xf32> to vector<8x8xf32>
      %cst_34 = arith.constant 0.000000e+00 : f32
      %48 = vector.broadcast %cst_34 : f32 to vector<8x8xf32>
      %49 = vector.extract_strided_slice %45 {offsets = [0, 32], sizes = [8, 8], strides = [1, 1]} : vector<8x96xf32> to vector<8x8xf32>
      %50 = vector.extract_strided_slice %45 {offsets = [0, 64], sizes = [8, 8], strides = [1, 1]} : vector<8x96xf32> to vector<8x8xf32>
      %cst_35 = arith.constant dense<0.000000e+00> : vector<8x8xf32>
      %51 = tpu.matmul %49, %47, %cst_35 {dimension_numbers = #tpu.dot_dimension_numbers<[1], [1], [0], [0], [0, 0, 1, 0], [], []>} : vector<8x8xf32>, vector<8x8xf32>, vector<8x8xf32> -> vector<8x8xf32>
      %cst_36 = arith.constant dense<0xFF800000> : vector<8xf32>
      %52 = vector.multi_reduction <maximumf>, %51, %cst_36 [1] : vector<8x8xf32> to vector<8xf32>
      %53 = vector.shape_cast %52 : vector<8xf32> to vector<8x1xf32>
      %54 = vector.broadcast %53 : vector<8x1xf32> to vector<8x8xf32>
      %55 = arith.subf %51, %54 : vector<8x8xf32>
      %56 = math.exp %55 : vector<8x8xf32>
      %cst_37 = arith.constant dense<0.000000e+00> : vector<8xf32>
      %57 = vector.multi_reduction <add>, %56, %cst_37 [1] : vector<8x8xf32> to vector<8xf32>
      %58 = vector.shape_cast %57 : vector<8xf32> to vector<8x1xf32>
      %59 = tpu.reciprocal %58 {approx = true} : vector<8x1xf32> -> vector<8x1xf32>
      %60 = vector.broadcast %59 : vector<8x1xf32> to vector<8x8xf32>
      %61 = arith.mulf %50, %60 : vector<8x8xf32>
      %cst_38 = arith.constant dense<0.000000e+00> : vector<8x8xf32>
      %62 = tpu.matmul %56, %61, %cst_38 {dimension_numbers = #tpu.dot_dimension_numbers<[0], [0], [1], [1], [0, 1, 1, 1], [], []>} : vector<8x8xf32>, vector<8x8xf32>, vector<8x8xf32> -> vector<8x8xf32>
      %63 = arith.addf %48, %62 : vector<8x8xf32>
      %c0_39 = arith.constant 0 : index
      %c0_40 = arith.constant 0 : index
      %64 = vector.load %arg12[%c0_39, %c0_40] : memref<8x32xf32, #tpu.memory_space<vmem>>, vector<8x8xf32>
      %65 = arith.addf %64, %63 : vector<8x8xf32>
      %c0_41 = arith.constant 0 : index
      %c0_42 = arith.constant 0 : index
      %66 = vector.load %arg12[%c0_41, %c0_42] : memref<8x32xf32, #tpu.memory_space<vmem>>, vector<8x8xf32>
      tpu.vector_store %arg12[%c0_41, %c0_42], %65 {strides = array<i32>} : memref<8x32xf32, #tpu.memory_space<vmem>>, vector<8x8xf32>,
      %67 = vector.extract_strided_slice %45 {offsets = [0, 8], sizes = [8, 8], strides = [1, 1]} : vector<8x96xf32> to vector<8x8xf32>
      %cst_43 = arith.constant 0.000000e+00 : f32
      %68 = vector.broadcast %cst_43 : f32 to vector<8x8xf32>
      %69 = vector.extract_strided_slice %45 {offsets = [0, 40], sizes = [8, 8], strides = [1, 1]} : vector<8x96xf32> to vector<8x8xf32>
      %70 = vector.extract_strided_slice %45 {offsets = [0, 72], sizes = [8, 8], strides = [1, 1]} : vector<8x96xf32> to vector<8x8xf32>
      %cst_44 = arith.constant dense<0.000000e+00> : vector<8x8xf32>
      %71 = tpu.matmul %69, %67, %cst_44 {dimension_numbers = #tpu.dot_dimension_numbers<[1], [1], [0], [0], [0, 0, 1, 0], [], []>} : vector<8x8xf32>, vector<8x8xf32>, vector<8x8xf32> -> vector<8x8xf32>
      %cst_45 = arith.constant dense<0xFF800000> : vector<8xf32>
      %72 = vector.multi_reduction <maximumf>, %71, %cst_45 [1] : vector<8x8xf32> to vector<8xf32>
      %73 = vector.shape_cast %72 : vector<8xf32> to vector<8x1xf32>
      %74 = vector.broadcast %73 : vector<8x1xf32> to vector<8x8xf32>
      %75 = arith.subf %71, %74 : vector<8x8xf32>
      %76 = math.exp %75 : vector<8x8xf32>
      %cst_46 = arith.constant dense<0.000000e+00> : vector<8xf32>
      %77 = vector.multi_reduction <add>, %76, %cst_46 [1] : vector<8x8xf32> to vector<8xf32>
      %78 = vector.shape_cast %77 : vector<8xf32> to vector<8x1xf32>
      %79 = tpu.reciprocal %78 {approx = true} : vector<8x1xf32> -> vector<8x1xf32>
      %80 = vector.broadcast %79 : vector<8x1xf32> to vector<8x8xf32>
      %81 = arith.mulf %70, %80 : vector<8x8xf32>
      %cst_47 = arith.constant dense<0.000000e+00> : vector<8x8xf32>
      %82 = tpu.matmul %76, %81, %cst_47 {dimension_numbers = #tpu.dot_dimension_numbers<[0], [0], [1], [1], [0, 1, 1, 1], [], []>} : vector<8x8xf32>, vector<8x8xf32>, vector<8x8xf32> -> vector<8x8xf32>
      %83 = arith.addf %68, %82 : vector<8x8xf32>
      %c0_48 = arith.constant 0 : index
      %c8 = arith.constant 8 : index
      %84 = vector.load %arg12[%c0_48, %c8] : memref<8x32xf32, #tpu.memory_space<vmem>>, vector<8x8xf32>
      %85 = arith.addf %84, %83 : vector<8x8xf32>
      %c0_49 = arith.constant 0 : index
      %c8_50 = arith.constant 8 : index
      %86 = vector.load %arg12[%c0_49, %c8_50] : memref<8x32xf32, #tpu.memory_space<vmem>>, vector<8x8xf32>
      tpu.vector_store %arg12[%c0_49, %c8_50], %85 {strides = array<i32>} : memref<8x32xf32, #tpu.memory_space<vmem>>, vector<8x8xf32>,
      %87 = vector.extract_strided_slice %45 {offsets = [0, 16], sizes = [8, 8], strides = [1, 1]} : vector<8x96xf32> to vector<8x8xf32>
      %cst_51 = arith.constant 0.000000e+00 : f32
      %88 = vector.broadcast %cst_51 : f32 to vector<8x8xf32>
      %89 = vector.extract_strided_slice %45 {offsets = [0, 48], sizes = [8, 8], strides = [1, 1]} : vector<8x96xf32> to vector<8x8xf32>
      %90 = vector.extract_strided_slice %45 {offsets = [0, 80], sizes = [8, 8], strides = [1, 1]} : vector<8x96xf32> to vector<8x8xf32>
      %cst_52 = arith.constant dense<0.000000e+00> : vector<8x8xf32>
      %91 = tpu.matmul %89, %87, %cst_52 {dimension_numbers = #tpu.dot_dimension_numbers<[1], [1], [0], [0], [0, 0, 1, 0], [], []>} : vector<8x8xf32>, vector<8x8xf32>, vector<8x8xf32> -> vector<8x8xf32>
      %cst_53 = arith.constant dense<0xFF800000> : vector<8xf32>
      %92 = vector.multi_reduction <maximumf>, %91, %cst_53 [1] : vector<8x8xf32> to vector<8xf32>
      %93 = vector.shape_cast %92 : vector<8xf32> to vector<8x1xf32>
      %94 = vector.broadcast %93 : vector<8x1xf32> to vector<8x8xf32>
      %95 = arith.subf %91, %94 : vector<8x8xf32>
      %96 = math.exp %95 : vector<8x8xf32>
      %cst_54 = arith.constant dense<0.000000e+00> : vector<8xf32>
      %97 = vector.multi_reduction <add>, %96, %cst_54 [1] : vector<8x8xf32> to vector<8xf32>
      %98 = vector.shape_cast %97 : vector<8xf32> to vector<8x1xf32>
      %99 = tpu.reciprocal %98 {approx = true} : vector<8x1xf32> -> vector<8x1xf32>
      %100 = vector.broadcast %99 : vector<8x1xf32> to vector<8x8xf32>
      %101 = arith.mulf %90, %100 : vector<8x8xf32>
      %cst_55 = arith.constant dense<0.000000e+00> : vector<8x8xf32>
      %102 = tpu.matmul %96, %101, %cst_55 {dimension_numbers = #tpu.dot_dimension_numbers<[0], [0], [1], [1], [0, 1, 1, 1], [], []>} : vector<8x8xf32>, vector<8x8xf32>, vector<8x8xf32> -> vector<8x8xf32>
      %103 = arith.addf %88, %102 : vector<8x8xf32>
      %c0_56 = arith.constant 0 : index
      %c16 = arith.constant 16 : index
      %104 = vector.load %arg12[%c0_56, %c16] : memref<8x32xf32, #tpu.memory_space<vmem>>, vector<8x8xf32>
      %105 = arith.addf %104, %103 : vector<8x8xf32>
      %c0_57 = arith.constant 0 : index
      %c16_58 = arith.constant 16 : index
      %106 = vector.load %arg12[%c0_57, %c16_58] : memref<8x32xf32, #tpu.memory_space<vmem>>, vector<8x8xf32>
      tpu.vector_store %arg12[%c0_57, %c16_58], %105 {strides = array<i32>} : memref<8x32xf32, #tpu.memory_space<vmem>>, vector<8x8xf32>,
      %107 = vector.extract_strided_slice %45 {offsets = [0, 24], sizes = [8, 8], strides = [1, 1]} : vector<8x96xf32> to vector<8x8xf32>
      %cst_59 = arith.constant 0.000000e+00 : f32
      %108 = vector.broadcast %cst_59 : f32 to vector<8x8xf32>
      %109 = vector.extract_strided_slice %45 {offsets = [0, 56], sizes = [8, 8], strides = [1, 1]} : vector<8x96xf32> to vector<8x8xf32>
      %110 = vector.extract_strided_slice %45 {offsets = [0, 88], sizes = [8, 8], strides = [1, 1]} : vector<8x96xf32> to vector<8x8xf32>
      %cst_60 = arith.constant dense<0.000000e+00> : vector<8x8xf32>
      %111 = tpu.matmul %109, %107, %cst_60 {dimension_numbers = #tpu.dot_dimension_numbers<[1], [1], [0], [0], [0, 0, 1, 0], [], []>} : vector<8x8xf32>, vector<8x8xf32>, vector<8x8xf32> -> vector<8x8xf32>
      %cst_61 = arith.constant dense<0xFF800000> : vector<8xf32>
      %112 = vector.multi_reduction <maximumf>, %111, %cst_61 [1] : vector<8x8xf32> to vector<8xf32>
      %113 = vector.shape_cast %112 : vector<8xf32> to vector<8x1xf32>
      %114 = vector.broadcast %113 : vector<8x1xf32> to vector<8x8xf32>
      %115 = arith.subf %111, %114 : vector<8x8xf32>
      %116 = math.exp %115 : vector<8x8xf32>
      %cst_62 = arith.constant dense<0.000000e+00> : vector<8xf32>
      %117 = vector.multi_reduction <add>, %116, %cst_62 [1] : vector<8x8xf32> to vector<8xf32>
      %118 = vector.shape_cast %117 : vector<8xf32> to vector<8x1xf32>
      %119 = tpu.reciprocal %118 {approx = true} : vector<8x1xf32> -> vector<8x1xf32>
      %120 = vector.broadcast %119 : vector<8x1xf32> to vector<8x8xf32>
      %121 = arith.mulf %110, %120 : vector<8x8xf32>
      %cst_63 = arith.constant dense<0.000000e+00> : vector<8x8xf32>
      %122 = tpu.matmul %116, %121, %cst_63 {dimension_numbers = #tpu.dot_dimension_numbers<[0], [0], [1], [1], [0, 1, 1, 1], [], []>} : vector<8x8xf32>, vector<8x8xf32>, vector<8x8xf32> -> vector<8x8xf32>
      %123 = arith.addf %108, %122 : vector<8x8xf32>
      %c0_64 = arith.constant 0 : index
      %c24 = arith.constant 24 : index
      %124 = vector.load %arg12[%c0_64, %c24] : memref<8x32xf32, #tpu.memory_space<vmem>>, vector<8x8xf32>
      %125 = arith.addf %124, %123 : vector<8x8xf32>
      %c0_65 = arith.constant 0 : index
      %c24_66 = arith.constant 24 : index
      %126 = vector.load %arg12[%c0_65, %c24_66] : memref<8x32xf32, #tpu.memory_space<vmem>>, vector<8x8xf32>
      tpu.vector_store %arg12[%c0_65, %c24_66], %125 {strides = array<i32>} : memref<8x32xf32, #tpu.memory_space<vmem>>, vector<8x8xf32>,
      %c0_67 = arith.constant 0 : index
      %c0_68 = arith.constant 0 : index
      %127 = vector.load %arg12[%c0_67, %c0_68] : memref<8x32xf32, #tpu.memory_space<vmem>>, vector<8x32xf32>
      %cst_69 = arith.constant dense<0.000000e+00> : vector<8xf32>
      %128 = vector.multi_reduction <add>, %127, %cst_69 [1] : vector<8x32xf32> to vector<8xf32>
      %129 = vector.shape_cast %128 : vector<8xf32> to vector<8x1xf32>
      %cst_70 = arith.constant 3.200000e+01 : f32
      %130 = vector.broadcast %cst_70 : f32 to vector<8x1xf32>
      %131 = arith.divf %129, %130 : vector<8x1xf32>
      %132 = vector.broadcast %131 : vector<8x1xf32> to vector<8x32xf32>
      %133 = arith.subf %127, %132 : vector<8x32xf32>
      %134 = arith.mulf %133, %133 : vector<8x32xf32>
      %cst_71 = arith.constant dense<0.000000e+00> : vector<8xf32>
      %135 = vector.multi_reduction <add>, %134, %cst_71 [1] : vector<8x32xf32> to vector<8xf32>
      %136 = vector.shape_cast %135 : vector<8xf32> to vector<8x1xf32>
      %cst_72 = arith.constant 3.200000e+01 : f32
      %137 = vector.broadcast %cst_72 : f32 to vector<8x1xf32>
      %138 = arith.divf %136, %137 : vector<8x1xf32>
      %cst_73 = arith.constant 9.99999974E-6 : f32
      %139 = vector.broadcast %cst_73 : f32 to vector<8x1xf32>
      %140 = arith.addf %138, %139 : vector<8x1xf32>
      %141 = math.rsqrt %140 : vector<8x1xf32>
      %142 = vector.broadcast %141 : vector<8x1xf32> to vector<8x32xf32>
      %143 = arith.mulf %133, %142 : vector<8x32xf32>
      %144 = vector.broadcast %19 : vector<1x32xf32> to vector<8x32xf32>
      %145 = arith.mulf %143, %144 : vector<8x32xf32>
      %146 = vector.broadcast %20 : vector<1x32xf32> to vector<8x32xf32>
      %147 = arith.addf %145, %146 : vector<8x32xf32>
      %c0_74 = arith.constant 0 : index
      %c0_75 = arith.constant 0 : index
      %148 = vector.load %arg13[%c0_74, %c0_75] : memref<8x32xf32, #tpu.memory_space<vmem>>, vector<8x32xf32>
      tpu.vector_store %arg13[%c0_74, %c0_75], %147 {strides = array<i32>} : memref<8x32xf32, #tpu.memory_space<vmem>>, vector<8x32xf32>,
      %c0_76 = arith.constant 0 : index
      %c0_77 = arith.constant 0 : index
      %149 = vector.load %arg10[%c0_76, %c0_77] : memref<1x32xf32, #tpu.memory_space<vmem>>, vector<1x32xf32>
      %150 = vector.broadcast %149 : vector<1x32xf32> to vector<8x32xf32>
      %151 = arith.addf %127, %150 : vector<8x32xf32>
      %c0_78 = arith.constant 0 : index
      %c0_79 = arith.constant 0 : index
      %152 = vector.load %arg12[%c0_78, %c0_79] : memref<8x32xf32, #tpu.memory_space<vmem>>, vector<8x32xf32>
      tpu.vector_store %arg12[%c0_78, %c0_79], %151 {strides = array<i32>} : memref<8x32xf32, #tpu.memory_space<vmem>>, vector<8x32xf32>,
    } else {
    }
    %c0 = arith.constant 0 : index
    %c0_1 = arith.constant 0 : index
    %3 = vector.load %arg13[%c0, %c0_1] : memref<8x32xf32, #tpu.memory_space<vmem>>, vector<8x32xf32>
    %c0_2 = arith.constant 0 : index
    %c0_3 = arith.constant 0 : index
    %4 = vector.load %arg7[%c0_2, %c0_3] : memref<32x128xf32, #tpu.memory_space<vmem>>, vector<32x128xf32>
    %cst = arith.constant dense<0.000000e+00> : vector<8x128xf32>
    %5 = tpu.matmul %3, %4, %cst {dimension_numbers = #tpu.dot_dimension_numbers<[1], [0], [0], [1], [0, 0, 1, 1], [], []>} : vector<8x32xf32>, vector<32x128xf32>, vector<8x128xf32> -> vector<8x128xf32>
    %c0_4 = arith.constant 0 : index
    %c0_5 = arith.constant 0 : index
    %6 = vector.load %arg8[%c0_4, %c0_5] : memref<1x128xf32, #tpu.memory_space<vmem>>, vector<1x128xf32>
    %7 = vector.broadcast %6 : vector<1x128xf32> to vector<8x128xf32>
    %8 = arith.addf %5, %7 : vector<8x128xf32>
    %c0_6 = arith.constant 0 : index
    %c0_7 = arith.constant 0 : index
    %9 = vector.load %arg12[%c0_6, %c0_7] : memref<8x32xf32, #tpu.memory_space<vmem>>, vector<8x32xf32>
    %c0_8 = arith.constant 0 : index
    %c0_9 = arith.constant 0 : index
    %10 = vector.load %arg9[%c0_8, %c0_9] : memref<128x32xf32, #tpu.memory_space<vmem>>, vector<128x32xf32>
    %cst_10 = arith.constant dense<0.000000e+00> : vector<8x32xf32>
    %11 = tpu.matmul %8, %10, %cst_10 {dimension_numbers = #tpu.dot_dimension_numbers<[1], [0], [0], [1], [0, 0, 1, 1], [], []>} : vector<8x128xf32>, vector<128x32xf32>, vector<8x32xf32> -> vector<8x32xf32>
    %12 = arith.addf %9, %11 : vector<8x32xf32>
    %c0_11 = arith.constant 0 : index
    %c0_12 = arith.constant 0 : index
    %13 = vector.load %arg12[%c0_11, %c0_12] : memref<8x32xf32, #tpu.memory_space<vmem>>, vector<8x32xf32>
    tpu.vector_store %arg12[%c0_11, %c0_12], %12 {strides = array<i32>} : memref<8x32xf32, #tpu.memory_space<vmem>>, vector<8x32xf32>,
    %c0_i32_13 = arith.constant 0 : i32
    %14 = arith.cmpi eq, %arg1, %c0_i32_13 : i32
    %15 = arith.extui %14 : i1 to i32
    %c0_i32_14 = arith.constant 0 : i32
    %16 = arith.cmpi ne, %15, %c0_i32_14 : i32
    scf.if %16 {
      %c0_15 = arith.constant 0 : index
      %c0_16 = arith.constant 0 : index
      %17 = vector.load %arg12[%c0_15, %c0_16] : memref<8x32xf32, #tpu.memory_space<vmem>>, vector<8x32xf32>
      %c0_17 = arith.constant 0 : index
      %c0_18 = arith.constant 0 : index
      %c0_19 = arith.constant 0 : index
      %18 = vector.load %arg11[%c0_17, %c0_18, %c0_19] : memref<1x8x32xf32, #tpu.memory_space<vmem>>, vector<1x8x32xf32>
      %19 = vector.shape_cast %18 : vector<1x8x32xf32> to vector<8x32xf32>
      %20 = vector.shape_cast %17 : vector<8x32xf32> to vector<1x8x32xf32>
      tpu.vector_store %arg11[%c0_17, %c0_18, %c0_19], %20 {strides = array<i32>} : memref<1x8x32xf32, #tpu.memory_space<vmem>>, vector<1x8x32xf32>,
    } else {
    }
    return
  }
  func.func @transform_0(%arg0: i32, %arg1: i32) -> (i32, i32, i32) {
    %c0_i32 = arith.constant 0 : i32
    %c0_i32_0 = arith.constant 0 : i32
    %c0_i32_1 = arith.constant 0 : i32
    return %arg0, %c0_i32, %c0_i32_0 : i32, i32, i32
  }
  func.func @transform_1(%arg0: i32, %arg1: i32) -> (i32, i32) {
    %c0_i32 = arith.constant 0 : i32
    %c0_i32_0 = arith.constant 0 : i32
    %c0_i32_1 = arith.constant 0 : i32
    return %c0_i32, %c0_i32_0 : i32, i32
  }
  func.func @transform_2(%arg0: i32, %arg1: i32) -> (i32, i32) {
    %c0_i32 = arith.constant 0 : i32
    %c0_i32_0 = arith.constant 0 : i32
    %c0_i32_1 = arith.constant 0 : i32
    return %c0_i32, %c0_i32_0 : i32, i32
  }
  func.func @transform_3(%arg0: i32, %arg1: i32) -> (i32, i32) {
    %c0_i32 = arith.constant 0 : i32
    %c0_i32_0 = arith.constant 0 : i32
    %c0_i32_1 = arith.constant 0 : i32
    return %c0_i32, %c0_i32_0 : i32, i32
  }
  func.func @transform_4(%arg0: i32, %arg1: i32) -> (i32, i32) {
    %c0_i32 = arith.constant 0 : i32
    %c0_i32_0 = arith.constant 0 : i32
    %c0_i32_1 = arith.constant 0 : i32
    return %c0_i32, %c0_i32_0 : i32, i32
  }
  func.func @transform_5(%arg0: i32, %arg1: i32) -> (i32, i32) {
    %c0_i32 = arith.constant 0 : i32
    %c0_i32_0 = arith.constant 0 : i32
    return %c0_i32, %arg1 : i32, i32
  }
  func.func @transform_6(%arg0: i32, %arg1: i32) -> (i32, i32) {
    %c0_i32 = arith.constant 0 : i32
    %c0_i32_0 = arith.constant 0 : i32
    return %c0_i32, %arg1 : i32, i32
  }
  func.func @transform_7(%arg0: i32, %arg1: i32) -> (i32, i32) {
    %c0_i32 = arith.constant 0 : i32
    %c0_i32_0 = arith.constant 0 : i32
    return %arg1, %c0_i32 : i32, i32
  }
  func.func @transform_8(%arg0: i32, %arg1: i32) -> (i32, i32) {
    %c0_i32 = arith.constant 0 : i32
    %c0_i32_0 = arith.constant 0 : i32
    %c0_i32_1 = arith.constant 0 : i32
    return %c0_i32, %c0_i32_0 : i32, i32
  }
  func.func @transform_9(%arg0: i32, %arg1: i32) -> (i32, i32, i32) {
    %c0_i32 = arith.constant 0 : i32
    %c0_i32_0 = arith.constant 0 : i32
    %c0_i32_1 = arith.constant 0 : i32
    return %arg0, %c0_i32, %c0_i32_0 : i32, i32, i32
  }
}

module attributes {stable_mosaic.version = 11 : i64} {
  func.func @kernel(%arg0: i32, %arg1: i32, %arg2: memref<1x8x32xf32, #tpu.memory_space<vmem>>, %arg3: memref<1x32xf32, #tpu.memory_space<vmem>>, %arg4: memref<1x32xf32, #tpu.memory_space<vmem>>, %arg5: memref<32x96xf32, #tpu.memory_space<vmem>>, %arg6: memref<1x96xf32, #tpu.memory_space<vmem>>, %arg7: memref<32x128xf32, #tpu.memory_space<vmem>>, %arg8: memref<1x128xf32, #tpu.memory_space<vmem>>, %arg9: memref<128x32xf32, #tpu.memory_space<vmem>>, %arg10: memref<1x32xf32, #tpu.memory_space<vmem>>, %arg11: memref<1x8x32xf32, #tpu.memory_space<vmem>>, %arg12: memref<8x32xf32, #tpu.memory_space<vmem>>, %arg13: memref<8x32xf32, #tpu.memory_space<vmem>>) attributes {dimension_semantics = [#tpu.dimension_semantics<parallel>, #tpu.dimension_semantics<arbitrary>], iteration_bounds = array<i64: 2, 1>, scalar_prefetch = 0 : i64, scratch_operands = 2 : i64, tpu.core_type = #tpu.core_type<tc>, window_params = [{transform_indices = @transform_0, window_bounds = array<i64: 1, 8, 32>}, {pipeline_mode = #tpu.pipeline_mode<synchronous>, transform_indices = @transform_1, window_bounds = array<i64: 1, 32>}, {pipeline_mode = #tpu.pipeline_mode<synchronous>, transform_indices = @transform_2, window_bounds = array<i64: 1, 32>}, {pipeline_mode = #tpu.pipeline_mode<synchronous>, transform_indices = @transform_3, window_bounds = array<i64: 32, 96>}, {pipeline_mode = #tpu.pipeline_mode<synchronous>, transform_indices = @transform_4, window_bounds = array<i64: 1, 96>}, {transform_indices = @transform_5, window_bounds = array<i64: 32, 128>}, {transform_indices = @transform_6, window_bounds = array<i64: 1, 128>}, {transform_indices = @transform_7, window_bounds = array<i64: 128, 32>}, {pipeline_mode = #tpu.pipeline_mode<synchronous>, transform_indices = @transform_8, window_bounds = array<i64: 1, 32>}, {transform_indices = @transform_9, window_bounds = array<i64: 1, 8, 32>}]} {
    %c0_i32 = arith.constant 0 : i32
    %0 = arith.cmpi eq, %arg1, %c0_i32 : i32
    %1 = arith.extui %0 : i1 to i32
    %c0_i32_0 = arith.constant 0 : i32
    %2 = arith.cmpi ne, %1, %c0_i32_0 : i32
    scf.if %2 {
      %c0_15 = arith.constant 0 : index
      %c0_16 = arith.constant 0 : index
      %c0_17 = arith.constant 0 : index
      %17 = vector.load %arg2[%c0_15, %c0_16, %c0_17] : memref<1x8x32xf32, #tpu.memory_space<vmem>>, vector<1x8x32xf32>
      %18 = vector.shape_cast %17 : vector<1x8x32xf32> to vector<8x32xf32>
      %c0_18 = arith.constant 0 : index
      %c0_19 = arith.constant 0 : index
      %19 = vector.load %arg3[%c0_18, %c0_19] : memref<1x32xf32, #tpu.memory_space<vmem>>, vector<1x32xf32>
      %c0_20 = arith.constant 0 : index
      %c0_21 = arith.constant 0 : index
      %20 = vector.load %arg4[%c0_20, %c0_21] : memref<1x32xf32, #tpu.memory_space<vmem>>, vector<1x32xf32>
      %cst_22 = arith.constant dense<0.000000e+00> : vector<8xf32>
      %21 = vector.multi_reduction <add>, %18, %cst_22 [1] : vector<8x32xf32> to vector<8xf32>
      %22 = vector.shape_cast %21 : vector<8xf32> to vector<8x1xf32>
      %cst_23 = arith.constant 3.200000e+01 : f32
      %23 = vector.broadcast %cst_23 : f32 to vector<8x1xf32>
      %24 = arith.divf %22, %23 : vector<8x1xf32>
      %25 = vector.broadcast %24 : vector<8x1xf32> to vector<8x32xf32>
      %26 = arith.subf %18, %25 : vector<8x32xf32>
      %27 = arith.mulf %26, %26 : vector<8x32xf32>
      %cst_24 = arith.constant dense<0.000000e+00> : vector<8xf32>
      %28 = vector.multi_reduction <add>, %27, %cst_24 [1] : vector<8x32xf32> to vector<8xf32>
      %29 = vector.shape_cast %28 : vector<8xf32> to vector<8x1xf32>
      %cst_25 = arith.constant 3.200000e+01 : f32
      %30 = vector.broadcast %cst_25 : f32 to vector<8x1xf32>
      %31 = arith.divf %29, %30 : vector<8x1xf32>
      %cst_26 = arith.constant 9.99999974E-6 : f32
      %32 = vector.broadcast %cst_26 : f32 to vector<8x1xf32>
      %33 = arith.addf %31, %32 : vector<8x1xf32>
      %34 = math.rsqrt %33 : vector<8x1xf32>
      %35 = vector.broadcast %34 : vector<8x1xf32> to vector<8x32xf32>
      %36 = arith.mulf %26, %35 : vector<8x32xf32>
      %37 = vector.broadcast %19 : vector<1x32xf32> to vector<8x32xf32>
      %38 = arith.mulf %36, %37 : vector<8x32xf32>
      %39 = vector.broadcast %20 : vector<1x32xf32> to vector<8x32xf32>
      %40 = arith.addf %38, %39 : vector<8x32xf32>
      %c0_27 = arith.constant 0 : index
      %c0_28 = arith.constant 0 : index
      %41 = vector.load %arg5[%c0_27, %c0_28] : memref<32x96xf32, #tpu.memory_space<vmem>>, vector<32x96xf32>
      %cst_29 = arith.constant dense<0.000000e+00> : vector<8x96xf32>
      %42 = tpu.matmul %40, %41, %cst_29 {dimension_numbers = #tpu.dot_dimension_numbers<[1], [0], [0], [1], [0, 0, 1, 1], [], []>} : vector<8x32xf32>, vector<32x96xf32>, vector<8x96xf32> -> vector<8x96xf32>
      %c0_30 = arith.constant 0 : index
      %c0_31 = arith.constant 0 : index
      %43 = vector.load %arg6[%c0_30, %c0_31] : memref<1x96xf32, #tpu.memory_space<vmem>>, vector<1x96xf32>
      %44 = vector.broadcast %43 : vector<1x96xf32> to vector<8x96xf32>
      %45 = arith.addf %42, %44 : vector<8x96xf32>
      %c0_32 = arith.constant 0 : index
      %c0_33 = arith.constant 0 : index
      %46 = vector.load %arg12[%c0_32, %c0_33] : memref<8x32xf32, #tpu.memory_space<vmem>>, vector<8x32xf32>
      tpu.vector_store %arg12[%c0_32, %c0_33], %18 {strides = array<i32>} : memref<8x32xf32, #tpu.memory_space<vmem>>, vector<8x32xf32>,
      %47 = vector.extract_strided_slice %45 {offsets = [0, 0], sizes = [8, 8], strides = [1, 1]} : vector<8x96xf32> to vector<8x8xf32>
      %cst_34 = arith.constant 0.000000e+00 : f32
      %48 = vector.broadcast %cst_34 : f32 to vector<8x8xf32>
      %49 = vector.extract_strided_slice %45 {offsets = [0, 32], sizes = [8, 8], strides = [1, 1]} : vector<8x96xf32> to vector<8x8xf32>
      %50 = vector.extract_strided_slice %45 {offsets = [0, 64], sizes = [8, 8], strides = [1, 1]} : vector<8x96xf32> to vector<8x8xf32>
      %cst_35 = arith.constant dense<0.000000e+00> : vector<8x8xf32>
      %51 = tpu.matmul %47, %49, %cst_35 {dimension_numbers = #tpu.dot_dimension_numbers<[1], [1], [0], [0], [0, 0, 1, 0], [], []>} : vector<8x8xf32>, vector<8x8xf32>, vector<8x8xf32> -> vector<8x8xf32>
      %cst_36 = arith.constant dense<0xFF800000> : vector<8xf32>
      %52 = vector.multi_reduction <maximumf>, %51, %cst_36 [0] : vector<8x8xf32> to vector<8xf32>
      %53 = vector.shape_cast %52 : vector<8xf32> to vector<1x8xf32>
      %54 = vector.broadcast %53 : vector<1x8xf32> to vector<8x8xf32>
      %55 = arith.subf %51, %54 : vector<8x8xf32>
      %56 = math.exp %55 : vector<8x8xf32>
      %cst_37 = arith.constant dense<0.000000e+00> : vector<8xf32>
      %57 = vector.multi_reduction <add>, %56, %cst_37 [0] : vector<8x8xf32> to vector<8xf32>
      %58 = vector.shape_cast %57 : vector<8xf32> to vector<1x8xf32>
      %59 = tpu.reciprocal %58 {approx = true} : vector<1x8xf32> -> vector<1x8xf32>
      %60 = vector.broadcast %59 : vector<1x8xf32> to vector<8x8xf32>
      %61 = arith.mulf %56, %60 : vector<8x8xf32>
      %cst_38 = arith.constant dense<0.000000e+00> : vector<8x8xf32>
      %62 = tpu.matmul %61, %50, %cst_38 {dimension_numbers = #tpu.dot_dimension_numbers<[1], [0], [0], [1], [0, 0, 1, 1], [], []>} : vector<8x8xf32>, vector<8x8xf32>, vector<8x8xf32> -> vector<8x8xf32>
      %63 = arith.addf %48, %62 : vector<8x8xf32>
      %c0_39 = arith.constant 0 : index
      %c0_40 = arith.constant 0 : index
      %64 = vector.load %arg12[%c0_39, %c0_40] : memref<8x32xf32, #tpu.memory_space<vmem>>, vector<8x8xf32>
      %65 = arith.addf %64, %63 : vector<8x8xf32>
      %c0_41 = arith.constant 0 : index
      %c0_42 = arith.constant 0 : index
      %66 = vector.load %arg12[%c0_41, %c0_42] : memref<8x32xf32, #tpu.memory_space<vmem>>, vector<8x8xf32>
      tpu.vector_store %arg12[%c0_41, %c0_42], %65 {strides = array<i32>} : memref<8x32xf32, #tpu.memory_space<vmem>>, vector<8x8xf32>,
      %67 = vector.extract_strided_slice %45 {offsets = [0, 8], sizes = [8, 8], strides = [1, 1]} : vector<8x96xf32> to vector<8x8xf32>
      %cst_43 = arith.constant 0.000000e+00 : f32
      %68 = vector.broadcast %cst_43 : f32 to vector<8x8xf32>
      %69 = vector.extract_strided_slice %45 {offsets = [0, 40], sizes = [8, 8], strides = [1, 1]} : vector<8x96xf32> to vector<8x8xf32>
      %70 = vector.extract_strided_slice %45 {offsets = [0, 72], sizes = [8, 8], strides = [1, 1]} : vector<8x96xf32> to vector<8x8xf32>
      %cst_44 = arith.constant dense<0.000000e+00> : vector<8x8xf32>
      %71 = tpu.matmul %67, %69, %cst_44 {dimension_numbers = #tpu.dot_dimension_numbers<[1], [1], [0], [0], [0, 0, 1, 0], [], []>} : vector<8x8xf32>, vector<8x8xf32>, vector<8x8xf32> -> vector<8x8xf32>
      %cst_45 = arith.constant dense<0xFF800000> : vector<8xf32>
      %72 = vector.multi_reduction <maximumf>, %71, %cst_45 [0] : vector<8x8xf32> to vector<8xf32>
      %73 = vector.shape_cast %72 : vector<8xf32> to vector<1x8xf32>
      %74 = vector.broadcast %73 : vector<1x8xf32> to vector<8x8xf32>
      %75 = arith.subf %71, %74 : vector<8x8xf32>
      %76 = math.exp %75 : vector<8x8xf32>
      %cst_46 = arith.constant dense<0.000000e+00> : vector<8xf32>
      %77 = vector.multi_reduction <add>, %76, %cst_46 [0] : vector<8x8xf32> to vector<8xf32>
      %78 = vector.shape_cast %77 : vector<8xf32> to vector<1x8xf32>
      %79 = tpu.reciprocal %78 {approx = true} : vector<1x8xf32> -> vector<1x8xf32>
      %80 = vector.broadcast %79 : vector<1x8xf32> to vector<8x8xf32>
      %81 = arith.mulf %76, %80 : vector<8x8xf32>
      %cst_47 = arith.constant dense<0.000000e+00> : vector<8x8xf32>
      %82 = tpu.matmul %81, %70, %cst_47 {dimension_numbers = #tpu.dot_dimension_numbers<[1], [0], [0], [1], [0, 0, 1, 1], [], []>} : vector<8x8xf32>, vector<8x8xf32>, vector<8x8xf32> -> vector<8x8xf32>
      %83 = arith.addf %68, %82 : vector<8x8xf32>
      %c0_48 = arith.constant 0 : index
      %c8 = arith.constant 8 : index
      %84 = vector.load %arg12[%c0_48, %c8] : memref<8x32xf32, #tpu.memory_space<vmem>>, vector<8x8xf32>
      %85 = arith.addf %84, %83 : vector<8x8xf32>
      %c0_49 = arith.constant 0 : index
      %c8_50 = arith.constant 8 : index
      %86 = vector.load %arg12[%c0_49, %c8_50] : memref<8x32xf32, #tpu.memory_space<vmem>>, vector<8x8xf32>
      tpu.vector_store %arg12[%c0_49, %c8_50], %85 {strides = array<i32>} : memref<8x32xf32, #tpu.memory_space<vmem>>, vector<8x8xf32>,
      %87 = vector.extract_strided_slice %45 {offsets = [0, 16], sizes = [8, 8], strides = [1, 1]} : vector<8x96xf32> to vector<8x8xf32>
      %cst_51 = arith.constant 0.000000e+00 : f32
      %88 = vector.broadcast %cst_51 : f32 to vector<8x8xf32>
      %89 = vector.extract_strided_slice %45 {offsets = [0, 48], sizes = [8, 8], strides = [1, 1]} : vector<8x96xf32> to vector<8x8xf32>
      %90 = vector.extract_strided_slice %45 {offsets = [0, 80], sizes = [8, 8], strides = [1, 1]} : vector<8x96xf32> to vector<8x8xf32>
      %cst_52 = arith.constant dense<0.000000e+00> : vector<8x8xf32>
      %91 = tpu.matmul %87, %89, %cst_52 {dimension_numbers = #tpu.dot_dimension_numbers<[1], [1], [0], [0], [0, 0, 1, 0], [], []>} : vector<8x8xf32>, vector<8x8xf32>, vector<8x8xf32> -> vector<8x8xf32>
      %cst_53 = arith.constant dense<0xFF800000> : vector<8xf32>
      %92 = vector.multi_reduction <maximumf>, %91, %cst_53 [0] : vector<8x8xf32> to vector<8xf32>
      %93 = vector.shape_cast %92 : vector<8xf32> to vector<1x8xf32>
      %94 = vector.broadcast %93 : vector<1x8xf32> to vector<8x8xf32>
      %95 = arith.subf %91, %94 : vector<8x8xf32>
      %96 = math.exp %95 : vector<8x8xf32>
      %cst_54 = arith.constant dense<0.000000e+00> : vector<8xf32>
      %97 = vector.multi_reduction <add>, %96, %cst_54 [0] : vector<8x8xf32> to vector<8xf32>
      %98 = vector.shape_cast %97 : vector<8xf32> to vector<1x8xf32>
      %99 = tpu.reciprocal %98 {approx = true} : vector<1x8xf32> -> vector<1x8xf32>
      %100 = vector.broadcast %99 : vector<1x8xf32> to vector<8x8xf32>
      %101 = arith.mulf %96, %100 : vector<8x8xf32>
      %cst_55 = arith.constant dense<0.000000e+00> : vector<8x8xf32>
      %102 = tpu.matmul %101, %90, %cst_55 {dimension_numbers = #tpu.dot_dimension_numbers<[1], [0], [0], [1], [0, 0, 1, 1], [], []>} : vector<8x8xf32>, vector<8x8xf32>, vector<8x8xf32> -> vector<8x8xf32>
      %103 = arith.addf %88, %102 : vector<8x8xf32>
      %c0_56 = arith.constant 0 : index
      %c16 = arith.constant 16 : index
      %104 = vector.load %arg12[%c0_56, %c16] : memref<8x32xf32, #tpu.memory_space<vmem>>, vector<8x8xf32>
      %105 = arith.addf %104, %103 : vector<8x8xf32>
      %c0_57 = arith.constant 0 : index
      %c16_58 = arith.constant 16 : index
      %106 = vector.load %arg12[%c0_57, %c16_58] : memref<8x32xf32, #tpu.memory_space<vmem>>, vector<8x8xf32>
      tpu.vector_store %arg12[%c0_57, %c16_58], %105 {strides = array<i32>} : memref<8x32xf32, #tpu.memory_space<vmem>>, vector<8x8xf32>,
      %107 = vector.extract_strided_slice %45 {offsets = [0, 24], sizes = [8, 8], strides = [1, 1]} : vector<8x96xf32> to vector<8x8xf32>
      %cst_59 = arith.constant 0.000000e+00 : f32
      %108 = vector.broadcast %cst_59 : f32 to vector<8x8xf32>
      %109 = vector.extract_strided_slice %45 {offsets = [0, 56], sizes = [8, 8], strides = [1, 1]} : vector<8x96xf32> to vector<8x8xf32>
      %110 = vector.extract_strided_slice %45 {offsets = [0, 88], sizes = [8, 8], strides = [1, 1]} : vector<8x96xf32> to vector<8x8xf32>
      %cst_60 = arith.constant dense<0.000000e+00> : vector<8x8xf32>
      %111 = tpu.matmul %107, %109, %cst_60 {dimension_numbers = #tpu.dot_dimension_numbers<[1], [1], [0], [0], [0, 0, 1, 0], [], []>} : vector<8x8xf32>, vector<8x8xf32>, vector<8x8xf32> -> vector<8x8xf32>
      %cst_61 = arith.constant dense<0xFF800000> : vector<8xf32>
      %112 = vector.multi_reduction <maximumf>, %111, %cst_61 [0] : vector<8x8xf32> to vector<8xf32>
      %113 = vector.shape_cast %112 : vector<8xf32> to vector<1x8xf32>
      %114 = vector.broadcast %113 : vector<1x8xf32> to vector<8x8xf32>
      %115 = arith.subf %111, %114 : vector<8x8xf32>
      %116 = math.exp %115 : vector<8x8xf32>
      %cst_62 = arith.constant dense<0.000000e+00> : vector<8xf32>
      %117 = vector.multi_reduction <add>, %116, %cst_62 [0] : vector<8x8xf32> to vector<8xf32>
      %118 = vector.shape_cast %117 : vector<8xf32> to vector<1x8xf32>
      %119 = tpu.reciprocal %118 {approx = true} : vector<1x8xf32> -> vector<1x8xf32>
      %120 = vector.broadcast %119 : vector<1x8xf32> to vector<8x8xf32>
      %121 = arith.mulf %116, %120 : vector<8x8xf32>
      %cst_63 = arith.constant dense<0.000000e+00> : vector<8x8xf32>
      %122 = tpu.matmul %121, %110, %cst_63 {dimension_numbers = #tpu.dot_dimension_numbers<[1], [0], [0], [1], [0, 0, 1, 1], [], []>} : vector<8x8xf32>, vector<8x8xf32>, vector<8x8xf32> -> vector<8x8xf32>
      %123 = arith.addf %108, %122 : vector<8x8xf32>
      %c0_64 = arith.constant 0 : index
      %c24 = arith.constant 24 : index
      %124 = vector.load %arg12[%c0_64, %c24] : memref<8x32xf32, #tpu.memory_space<vmem>>, vector<8x8xf32>
      %125 = arith.addf %124, %123 : vector<8x8xf32>
      %c0_65 = arith.constant 0 : index
      %c24_66 = arith.constant 24 : index
      %126 = vector.load %arg12[%c0_65, %c24_66] : memref<8x32xf32, #tpu.memory_space<vmem>>, vector<8x8xf32>
      tpu.vector_store %arg12[%c0_65, %c24_66], %125 {strides = array<i32>} : memref<8x32xf32, #tpu.memory_space<vmem>>, vector<8x8xf32>,
      %c0_67 = arith.constant 0 : index
      %c0_68 = arith.constant 0 : index
      %127 = vector.load %arg12[%c0_67, %c0_68] : memref<8x32xf32, #tpu.memory_space<vmem>>, vector<8x32xf32>
      %cst_69 = arith.constant dense<0.000000e+00> : vector<8xf32>
      %128 = vector.multi_reduction <add>, %127, %cst_69 [1] : vector<8x32xf32> to vector<8xf32>
      %129 = vector.shape_cast %128 : vector<8xf32> to vector<8x1xf32>
      %cst_70 = arith.constant 3.200000e+01 : f32
      %130 = vector.broadcast %cst_70 : f32 to vector<8x1xf32>
      %131 = arith.divf %129, %130 : vector<8x1xf32>
      %132 = vector.broadcast %131 : vector<8x1xf32> to vector<8x32xf32>
      %133 = arith.subf %127, %132 : vector<8x32xf32>
      %134 = arith.mulf %133, %133 : vector<8x32xf32>
      %cst_71 = arith.constant dense<0.000000e+00> : vector<8xf32>
      %135 = vector.multi_reduction <add>, %134, %cst_71 [1] : vector<8x32xf32> to vector<8xf32>
      %136 = vector.shape_cast %135 : vector<8xf32> to vector<8x1xf32>
      %cst_72 = arith.constant 3.200000e+01 : f32
      %137 = vector.broadcast %cst_72 : f32 to vector<8x1xf32>
      %138 = arith.divf %136, %137 : vector<8x1xf32>
      %cst_73 = arith.constant 9.99999974E-6 : f32
      %139 = vector.broadcast %cst_73 : f32 to vector<8x1xf32>
      %140 = arith.addf %138, %139 : vector<8x1xf32>
      %141 = math.rsqrt %140 : vector<8x1xf32>
      %142 = vector.broadcast %141 : vector<8x1xf32> to vector<8x32xf32>
      %143 = arith.mulf %133, %142 : vector<8x32xf32>
      %144 = vector.broadcast %19 : vector<1x32xf32> to vector<8x32xf32>
      %145 = arith.mulf %143, %144 : vector<8x32xf32>
      %146 = vector.broadcast %20 : vector<1x32xf32> to vector<8x32xf32>
      %147 = arith.addf %145, %146 : vector<8x32xf32>
      %c0_74 = arith.constant 0 : index
      %c0_75 = arith.constant 0 : index
      %148 = vector.load %arg13[%c0_74, %c0_75] : memref<8x32xf32, #tpu.memory_space<vmem>>, vector<8x32xf32>
      tpu.vector_store %arg13[%c0_74, %c0_75], %147 {strides = array<i32>} : memref<8x32xf32, #tpu.memory_space<vmem>>, vector<8x32xf32>,
      %c0_76 = arith.constant 0 : index
      %c0_77 = arith.constant 0 : index
      %149 = vector.load %arg10[%c0_76, %c0_77] : memref<1x32xf32, #tpu.memory_space<vmem>>, vector<1x32xf32>
      %150 = vector.broadcast %149 : vector<1x32xf32> to vector<8x32xf32>
      %151 = arith.addf %127, %150 : vector<8x32xf32>
      %c0_78 = arith.constant 0 : index
      %c0_79 = arith.constant 0 : index
      %152 = vector.load %arg12[%c0_78, %c0_79] : memref<8x32xf32, #tpu.memory_space<vmem>>, vector<8x32xf32>
      tpu.vector_store %arg12[%c0_78, %c0_79], %151 {strides = array<i32>} : memref<8x32xf32, #tpu.memory_space<vmem>>, vector<8x32xf32>,
    } else {
    }
    %c0 = arith.constant 0 : index
    %c0_1 = arith.constant 0 : index
    %3 = vector.load %arg13[%c0, %c0_1] : memref<8x32xf32, #tpu.memory_space<vmem>>, vector<8x32xf32>
    %c0_2 = arith.constant 0 : index
    %c0_3 = arith.constant 0 : index
    %4 = vector.load %arg7[%c0_2, %c0_3] : memref<32x128xf32, #tpu.memory_space<vmem>>, vector<32x128xf32>
    %cst = arith.constant dense<0.000000e+00> : vector<8x128xf32>
    %5 = tpu.matmul %3, %4, %cst {dimension_numbers = #tpu.dot_dimension_numbers<[1], [0], [0], [1], [0, 0, 1, 1], [], []>} : vector<8x32xf32>, vector<32x128xf32>, vector<8x128xf32> -> vector<8x128xf32>
    %c0_4 = arith.constant 0 : index
    %c0_5 = arith.constant 0 : index
    %6 = vector.load %arg8[%c0_4, %c0_5] : memref<1x128xf32, #tpu.memory_space<vmem>>, vector<1x128xf32>
    %7 = vector.broadcast %6 : vector<1x128xf32> to vector<8x128xf32>
    %8 = arith.addf %5, %7 : vector<8x128xf32>
    %c0_6 = arith.constant 0 : index
    %c0_7 = arith.constant 0 : index
    %9 = vector.load %arg12[%c0_6, %c0_7] : memref<8x32xf32, #tpu.memory_space<vmem>>, vector<8x32xf32>
    %c0_8 = arith.constant 0 : index
    %c0_9 = arith.constant 0 : index
    %10 = vector.load %arg9[%c0_8, %c0_9] : memref<128x32xf32, #tpu.memory_space<vmem>>, vector<128x32xf32>
    %cst_10 = arith.constant dense<0.000000e+00> : vector<8x32xf32>
    %11 = tpu.matmul %8, %10, %cst_10 {dimension_numbers = #tpu.dot_dimension_numbers<[1], [0], [0], [1], [0, 0, 1, 1], [], []>} : vector<8x128xf32>, vector<128x32xf32>, vector<8x32xf32> -> vector<8x32xf32>
    %12 = arith.addf %9, %11 : vector<8x32xf32>
    %c0_11 = arith.constant 0 : index
    %c0_12 = arith.constant 0 : index
    %13 = vector.load %arg12[%c0_11, %c0_12] : memref<8x32xf32, #tpu.memory_space<vmem>>, vector<8x32xf32>
    tpu.vector_store %arg12[%c0_11, %c0_12], %12 {strides = array<i32>} : memref<8x32xf32, #tpu.memory_space<vmem>>, vector<8x32xf32>,
    %c0_i32_13 = arith.constant 0 : i32
    %14 = arith.cmpi eq, %arg1, %c0_i32_13 : i32
    %15 = arith.extui %14 : i1 to i32
    %c0_i32_14 = arith.constant 0 : i32
    %16 = arith.cmpi ne, %15, %c0_i32_14 : i32
    scf.if %16 {
      %c0_15 = arith.constant 0 : index
      %c0_16 = arith.constant 0 : index
      %17 = vector.load %arg12[%c0_15, %c0_16] : memref<8x32xf32, #tpu.memory_space<vmem>>, vector<8x32xf32>
      %c0_17 = arith.constant 0 : index
      %c0_18 = arith.constant 0 : index
      %c0_19 = arith.constant 0 : index
      %18 = vector.load %arg11[%c0_17, %c0_18, %c0_19] : memref<1x8x32xf32, #tpu.memory_space<vmem>>, vector<1x8x32xf32>
      %19 = vector.shape_cast %18 : vector<1x8x32xf32> to vector<8x32xf32>
      %20 = vector.shape_cast %17 : vector<8x32xf32> to vector<1x8x32xf32>
      tpu.vector_store %arg11[%c0_17, %c0_18, %c0_19], %20 {strides = array<i32>} : memref<1x8x32xf32, #tpu.memory_space<vmem>>, vector<1x8x32xf32>,
    } else {
    }
    return
  }
  func.func @transform_0(%arg0: i32, %arg1: i32) -> (i32, i32, i32) {
    %c0_i32 = arith.constant 0 : i32
    %c0_i32_0 = arith.constant 0 : i32
    %c0_i32_1 = arith.constant 0 : i32
    return %arg0, %c0_i32, %c0_i32_0 : i32, i32, i32
  }
  func.func @transform_1(%arg0: i32, %arg1: i32) -> (i32, i32) {
    %c0_i32 = arith.constant 0 : i32
    %c0_i32_0 = arith.constant 0 : i32
    %c0_i32_1 = arith.constant 0 : i32
    return %c0_i32, %c0_i32_0 : i32, i32
  }
  func.func @transform_2(%arg0: i32, %arg1: i32) -> (i32, i32) {
    %c0_i32 = arith.constant 0 : i32
    %c0_i32_0 = arith.constant 0 : i32
    %c0_i32_1 = arith.constant 0 : i32
    return %c0_i32, %c0_i32_0 : i32, i32
  }
  func.func @transform_3(%arg0: i32, %arg1: i32) -> (i32, i32) {
    %c0_i32 = arith.constant 0 : i32
    %c0_i32_0 = arith.constant 0 : i32
    %c0_i32_1 = arith.constant 0 : i32
    return %c0_i32, %c0_i32_0 : i32, i32
  }
  func.func @transform_4(%arg0: i32, %arg1: i32) -> (i32, i32) {
    %c0_i32 = arith.constant 0 : i32
    %c0_i32_0 = arith.constant 0 : i32
    %c0_i32_1 = arith.constant 0 : i32
    return %c0_i32, %c0_i32_0 : i32, i32
  }
  func.func @transform_5(%arg0: i32, %arg1: i32) -> (i32, i32) {
    %c0_i32 = arith.constant 0 : i32
    %c0_i32_0 = arith.constant 0 : i32
    return %c0_i32, %arg1 : i32, i32
  }
  func.func @transform_6(%arg0: i32, %arg1: i32) -> (i32, i32) {
    %c0_i32 = arith.constant 0 : i32
    %c0_i32_0 = arith.constant 0 : i32
    return %c0_i32, %arg1 : i32, i32
  }
  func.func @transform_7(%arg0: i32, %arg1: i32) -> (i32, i32) {
    %c0_i32 = arith.constant 0 : i32
    %c0_i32_0 = arith.constant 0 : i32
    return %arg1, %c0_i32 : i32, i32
  }
  func.func @transform_8(%arg0: i32, %arg1: i32) -> (i32, i32) {
    %c0_i32 = arith.constant 0 : i32
    %c0_i32_0 = arith.constant 0 : i32
    %c0_i32_1 = arith.constant 0 : i32
    return %c0_i32, %c0_i32_0 : i32, i32
  }
  func.func @transform_9(%arg0: i32, %arg1: i32) -> (i32, i32, i32) {
    %c0_i32 = arith.constant 0 : i32
    %c0_i32_0 = arith.constant 0 : i32
    %c0_i32_1 = arith.constant 0 : i32
    return %arg0, %c0_i32, %c0_i32_0 : i32, i32, i32
  }
}

</mosaic_0001>

<bundles_post_ra>
// kernel: tpu_custom_call.1
= control target key start
LH: loop header
LB: loop body
LE: loop exit
PB: predicated region body
PF: predicated region fallthrough
CT: control target
= control target key end

     0   :  { %s2371_s0 = inlined_call_operand.vmem [shape: f32[2,8,32], index: 0, kind: input, shape index: {}]   ;;  %s2372_s1 = inlined_call_operand.vmem [shape: f32[1,32], index: 1, kind: input, shape index: {}]   ;;  %s2373_s2 = inlined_call_operand.vmem [shape: f32[1,32], index: 2, kind: input, shape index: {}]   ;;  %s2374_s3 = inlined_call_operand.vmem [shape: f32[32,96], index: 3, kind: input, shape index: {}]   ;;  %s2375_s4 = inlined_call_operand.vmem [shape: f32[1,96], index: 4, kind: input, shape index: {}]   ;;  %s2376_s5 = inlined_call_operand.vmem [shape: f32[32,128], index: 5, kind: input, shape index: {}]   ;;  %s2377_s6 = inlined_call_operand.vmem [shape: f32[1,128], index: 6, kind: input, shape index: {}]   ;;  %s2378_s7 = inlined_call_operand.vmem [shape: f32[128,32], index: 7, kind: input, shape index: {}]   ;;  %s2379_s8 = inlined_call_operand.vmem [shape: f32[1,32], index: 8, kind: input, shape index: {}]   ;;  %s2380_s9 = inlined_call_operand.hbm [shape: f32[2,8,32], index: 9, kind: output, shape index: {}]  }
   0x1   :  { %2381 = sst [smem:[#allocation7_spill]] %s2371_s0 }
   0x2   :  { %14 = vsyncpa [#allocation5], 0 }
   0x3   :  { %16 = vsyncpa [#allocation5 + $0x1], 0  ;;  %s2071_s30 = smov 0   ;;  %s2073_s10 = smov 0  }
   0x4   :  { %s2075_s11 = smov 0   ;;  %s2077_s12 = smov 0  }
   0x5   :  { %s2079_s13 = smov 0   ;;  %s2081_s14 = smov 0  }
   0x6 LB: > { %s1662_s15 = sadd.s32 4294967295, %s2002_s14   ;;  %s1663_s16 = sadd.s32 4294967294, %s2002_s14   ;;  %s2002_s14 = sphi %s2081_s14, %s22_s14   ;;  %s1998_s13 = sphi %s2079_s13, %s2389_s13   ;;  %s1994_s12 = sphi %s2077_s12, %s2388_s12   ;;  %s1990_s11 = sphi %s2075_s11, %s2387_s11   ;;  %s1986_s10 = sphi %s2073_s10, %s2386_s10   ;;  %s1982_s30 = sphi %s2071_s30, %s2385_s30  }
   0x7   : > { %s34_s17 = sadd.s32 1, %s1998_s13  ;;  %s250_s18 = sadd.s32 1, %s1990_s11 }
   0x8   : > { %p36_p0 = scmp.ge.s32.totalorder %s34_s17, 2  ;;  %p260_p1 = scmp.ne.s32.totalorder %s1990_s11, %s1986_s10 }
   0x9   : > { %p261_p2 = scmp.eq.s32.totalorder %s1662_s15, 1  ;;  %p266_p3 = scmp.ne.s32.totalorder %s1986_s10, %s1982_s30 }
   0xa   : > { %s2391_s17 = smov (%p36_p0, %s34_s17), 0  ;;  %p267_p5 = scmp.eq.s32.totalorder %s1663_s16, 1 }
   0xb   : > { %p2111_p4 = por %p261_p2, %p260_p1  ;;  %s247_s20 = ssub.s32 %s1998_s13, %s2391_s17 }
   0xc   : > { %p1669_p6 = scmp.ge.s32.totalorder %s2002_s14, 1  ;;  %p248_p7 = scmp.eq.s32.totalorder %s247_s20, 0 }
   0xd   : > { %p2118_p8 = por %p267_p5, %p266_p3  ;;  %p329_p9 = scmp.lt.s32.totalorder %s2002_s14, 3 }
   0xe   : > { %s2124_s22 = scalar_select %p248_p7, %s1990_s11, %s250_s18  }
   0xf   : > { %p330_p10 = pnand %p1669_p6, %p329_p9 }
  0x10   : > { %p376_p11 = scmp.lt.s32.totalorder (!%p330_p10), %s1994_s12, 1  ;;  %s2384_s0 = sld [smem:[#allocation7_spill]] (!%p330_p10) }
  0x11   : > { %333 = sbr.rel (%p330_p10) target bundleno = 3657 (0xe49), region = 56  ;;  %s2006_s16 = smov (!%p330_p10), 96  }
  0x12   : > { %s2007_s18 = smov (!%p330_p10), 112   ;;  %s2008_s20 = smov (!%p330_p10), 64  }
  0x13   : > { %s2011_s25 = smov (!%p330_p10), 80   ;;  %s2012_s26 = smov (!%p330_p10), 104  }
  0x14   : > { %s2014_s28 = smov (!%p330_p10), 56   ;;  %s2015_s29 = smov (!%p330_p10), 48  }
  0x15   : > { %s2016_s15 = smov (!%p330_p10), 40  }
  0x16   : > { %s377_s23 = scalar_select %p376_p11, %s1994_s12, 1  ;;  %vm400_vm0 = vcmask 261120   ;;  %v432_v7 = vld [vmem:[%s2374_s3 + $0x18] sm:$0xff]  ;;  %v2004_v8 = vmov 0.0   ;;  %v431_v9 = vld [vmem:[%s2374_s3 + $0x10] sm:$0xff]  ;;  %vm2005_vm1 = vmmov 0  }
  0x17   : > { %1738 = vmatprep.subr.mxu0 %v2004_v8  ;;  %1746 = vmatprep.mubr.msk.f32.mxu0 %vm2005_vm1, %v2004_v8  ;;  %v430_v10 = vld [vmem:[%s2374_s3 + $0x8] sm:$0xff]  ;;  %v429_v11 = vld [vmem:[%s2374_s3] sm:$0xff]  ;;  %vm517_vm2 = vcmask 64512   ;;  %vm919_vm3 = vcmask 130112   ;;  %vm1125_vm4 = vcmask 195712   ;;  %vm1331_vm5 = vcmask 261312  }
  0x18   : > { %s1671_s24 = sshll.u32 %s377_s23, 3  ;;  %1739 = vmatpush3.msra.mxu0 %v432_v7  ;;  %1774 = vmatprep.subr.mxu1 %v2004_v8  ;;  %v2159_v16 = vld [vmem:[%s2372_s1] ss:$0 sm:$0xff]  ;;  %s2009_s23 = smov 120  }
  0x19   : > { %s379_s27 = scalar_lea.vmem %s2384_s0, %s1671_s24  ;;  %1740 = vmatprep.subr.mxu0 %v2004_v8  ;;  %1776 = vmatprep.mubr.msk.f32.mxu1 %vm2005_vm1, %v2004_v8  ;;  %v2164_v18 = vld [vmem:[%s2373_s2] ss:$0 sm:$0xff]  ;;  %s2010_s24 = smov 88  }
  0x1a   : > { %v397_v0 = vld [vmem:[%s379_s27] sm:$0xff]  ;;  %1741 = vmatpush3.msra.mxu0 %v431_v9  ;;  %s2013_s27 = smov 72  }
  0x1b   : > { %v401_v1 = vsel %vm400_vm0, %v397_v0, 0.0  ;;  %513 = vst.msk [vmem:[#allocation2] sm:$0xff] %vm400_vm0, %v397_v0  ;;  %1742 = vmatprep.subr.mxu0 %v2004_v8  ;;  %v1674_v21 = vld [vmem:[%s2375_s4] ss:$0 sm:$0xff] }
  0x1c   : > { %402 = vadd.xlane.f32.xlu0 %v401_v1  ;;  %1743 = vmatpush3.msra.mxu0 %v430_v10 }
  0x1d   : > { %1744 = vmatprep.subr.mxu0 %v2004_v8 }
  0x1e   : > { %1745 = vmatpush3.msra.mxu0 %v429_v11 }
  0x1f   : > { %1749 = vmatprep.subr.mxu0 %v2004_v8 }
  0x22   : > { %v712_v41 = vld [vmem:[#allocation2] sm:$0xff] }
  0xa5   : > { %v403_v2 = vpop.xlane.xlu0 %402 }
  0xa6   : > { %v405_v3 = vmul.f32 0.03125, %v403_v2 }
  0xa8   : > { %v406_v4 = vsub.f32 %v397_v0, %v405_v3 }
  0xaa   : > { %v407_v5 = vmul.f32 %v406_v4, %v406_v4 }
  0xac   : > { %v408_v6 = vsel %vm400_vm0, %v407_v5, 0.0 }
  0xad   : > { %409 = vadd.xlane.f32.xlu0 %v408_v6 }
 0x136   : > { %v410_v12 = vpop.xlane.xlu0 %409 }
 0x137   : > { %v411_v13 = vmul.f32 0.03125, %v410_v12 }
 0x139   : > { %v412_v14 = vadd.f32 1e-05, %v411_v13 }
 0x13b   : > { %1906 = vrsqrt.f32 %v412_v14 }
 0x148   : > { %v1907_v15 = vpop.eup %1906 }
 0x149   : > { %v414_v17 = vmul.f32 %v1907_v15, %v406_v4 }
 0x14b   : > { %v421_v19 = vmul.f32 %v2159_v16, %v414_v17 }
 0x14d   : > { %v428_v20 = vadd.f32 %v2164_v18, %v421_v19 }
 0x14f   : > { %1747 = vmatmul.mubr.msk.f32.vlgmr.msra.gmra.mxu0 %vm400_vm0, %v428_v20 }
 0x150   : > { %1751 = vmatprep.mubr.msk.f32.mxu0 %vm2005_vm1, %v2004_v8 }
 0x20f   : > { %v509_v22 = vpop.f32.mrf.mxu0 }
 0x210   : > { %v2174_v23 = vadd.f32 %v1674_v21, %v509_v22 }
 0x211   : > { %v1748_v24 = vpop.f32.mrf.mxu0 }
 0x212   : > { %515 = vrot.lane.b32.xlu1 %v2174_v23, %s2006_s16  ;;  %1750 = vmatpush3.xpose.msk.msra.mxu0 %vm517_vm2, %v2174_v23  ;;  %s2017_s16 = smov 8  }
 0x213   : > { %1754 = vmatprep.subr.mxu0 %v2004_v8 }
 0x284   : > { %v516_v25 = vpop.permute.xlu1 %515 }
 0x285   : > { %1752 = vmatmul.mubr.msk.f32.vlgmr.msra.gmra.mxu0 %vm517_vm2, %v516_v25 }
 0x286   : > { %1756 = vmatprep.mubr.msk.f32.mxu0 %vm2005_vm1, %v2004_v8 }
 0x345   : > { %v588_v26 = vpop.f32.mrf.mxu0 }
 0x346   : > { %v592_v27 = vsel %vm517_vm2, %v588_v26, -inf }
 0x347   : > { %593 = vmax.xlane.f32.xlu1 %v592_v27  ;;  %v1753_v28 = vpop.f32.mrf.mxu0 }
 0x3d0   : > { %v594_v29 = vpop.xlane.xlu1 %593 }
 0x3d1   : > { %v595_v30 = vsub.f32 %v588_v26, %v594_v29 }
 0x3d3   : > { %v596_v31 = vmul.f32 1.442695, %v595_v30 }
 0x3d5   : > { %1908 = vpow2.f32 %v596_v31 }
 0x3e2   : > { %v1909_v32 = vpop.eup %1908 }
 0x3e3   : > { %603 = vxpose.xlu1.b32.start.end [1/1] (short) (narrow) %v1909_v32, 8  ;;  %v598_v33 = vsel %vm517_vm2, %v1909_v32, 0.0 }
 0x3e4   : > { %599 = vadd.xlane.f32.xlu0 %v598_v33 }
 0x401   : > { %923 = vrot.lane.b32.xlu1 %v2174_v23, %s2007_s18  ;;  %s2018_s18 = smov 16  }
 0x45f   : > { %v619_v38 = vpop.trf.xlu1 }
 0x46d   : > { %v600_v34 = vpop.xlane.xlu0 %599 }
 0x46e   : > { %1910 = vrcp.f32 %v600_v34 }
 0x473   : > { %v924_v61 = vpop.permute.xlu1 %923 }
 0x47b   : > { %v1911_v35 = vpop.eup %1910 }
 0x47c   : > { %v602_v36 = vmul.f32 %v1911_v35, %v2174_v23 }
 0x47e   : > { %636 = vrot.lane.b32.xlu0 %v602_v36, %s2008_s20  ;;  %s2019_s20 = smov 24  }
 0x482   : > { %717 = vrot.lane.b32.xlu0 %v2174_v23, %s2009_s23  ;;  %s373_s23 = sand.u32 1, %s1986_s10  }
 0x486   : > { %715 = vrot.lane.b32.xlu0 %v2174_v23, %s2010_s24  ;;  %s1670_s24 = sshll.u32 %s373_s23, 3 }
 0x4f0   : > { %v637_v37 = vpop.permute.xlu0 %636 }
 0x4f1   : > { %1755 = vmatpush3.msra.mxu0 %v637_v37 }
 0x4f2   : > { %1757 = vmatmul.mubr.msk.f32.vlgmr.msra.gmra.mxu0 %vm517_vm2, %v619_v38  ;;  %1759 = vmatprep.subr.mxu0 %v2004_v8 }
 0x4f3   : > { %1761 = vmatprep.mubr.msk.f32.mxu0 %vm2005_vm1, %v2004_v8 }
 0x4f4   : > { %v718_v39 = vpop.permute.xlu0 %717 }
 0x4f5   : > { %1760 = vmatpush3.xpose.msk.msra.mxu0 %vm517_vm2, %v718_v39 }
 0x4f6   : > { %1764 = vmatprep.subr.mxu0 %v2004_v8 }
 0x4f8   : > { %v716_v40 = vpop.permute.xlu0 %715 }
 0x4f9   : > { %1762 = vmatmul.mubr.msk.f32.vlgmr.msra.gmra.mxu0 %vm517_vm2, %v716_v40 }
 0x4fa   : > { %1766 = vmatprep.mubr.msk.f32.mxu0 %vm2005_vm1, %v2004_v8 }
 0x5b2   : > { %v708_v42 = vpop.f32.mrf.mxu0 }
 0x5b3   : > { %v713_v43 = vadd.f32 %v712_v41, %v708_v42  ;;  %v1688_v42 = vld [vmem:[%s2379_s8] ss:$0 sm:$0xff] }
 0x5b4   : > { %v1758_v44 = vpop.f32.mrf.mxu0 }
 0x5b5   : > { %714 = vst.msk [vmem:[#allocation2] sm:$0xff] %vm517_vm2, %v713_v43 }
 0x5b9   : > { %v789_v45 = vpop.f32.mrf.mxu0 }
 0x5ba   : > { %v793_v46 = vsel %vm517_vm2, %v789_v45, -inf }
 0x5bb   : > { %794 = vmax.xlane.f32.xlu0 %v793_v46  ;;  %v1763_v47 = vpop.f32.mrf.mxu0 }
 0x5bc   : > { %v913_v29 = vld [vmem:[#allocation2] sm:$0xff] }
 0x644   : > { %v795_v48 = vpop.xlane.xlu0 %794 }
 0x645   : > { %v796_v49 = vsub.f32 %v789_v45, %v795_v48 }
 0x647   : > { %v797_v50 = vmul.f32 1.442695, %v796_v49 }
 0x649   : > { %1912 = vpow2.f32 %v797_v50 }
 0x656   : > { %v1913_v51 = vpop.eup %1912 }
 0x657   : > { %v799_v52 = vsel %vm517_vm2, %v1913_v51, 0.0 }
 0x658   : > { %800 = vadd.xlane.f32.xlu0 %v799_v52  ;;  %v1362_v52 = vld [vmem:[%s2376_s5 + $0x10] sm:$0xff] }
 0x66e   : > { %921 = vrot.lane.b32.xlu0 %v2174_v23, %s2011_s25  ;;  %s1692_s25 = sshll.u32 %s1994_s12, 7 }
 0x672   : > { %1129 = vrot.lane.b32.xlu0 %v2174_v23, %s2012_s26  ;;  %s375_s26 = scalar_lea.vmem [#allocation4], %s1670_s24 }
 0x676   : > { %1127 = vrot.lane.b32.xlu0 %v2174_v23, %s2013_s27  ;;  %s1553_s27 = sshll.u32 %s375_s26, 4  ;;  %s1554_s27 = int_to_ptr.vmem [resolvable:$true] %s1553_s27 }
 0x6e1   : > { %v801_v53 = vpop.xlane.xlu0 %800 }
 0x6e2   : > { %1914 = vrcp.f32 %v801_v53  ;;  %v1361_v53 = vld [vmem:[%s2376_s5 + $0x8] sm:$0xff] }
 0x6e5   : > { %v922_v56 = vpop.permute.xlu0 %921 }
 0x6e9   : > { %v1130_v57 = vpop.permute.xlu0 %1129 }
 0x6ed   : > { %v1128_v58 = vpop.permute.xlu0 %1127 }
 0x6ef   : > { %v1915_v54 = vpop.eup %1914 }
 0x6f0   : > { %v803_v55 = vmul.f32 %v1915_v54, %v2174_v23  ;;  %v1360_v54 = vld [vmem:[%s2376_s5] sm:$0xff] }
 0x6f2   : > { %837 = vrot.lane.b32.xlu0 %v803_v55, %s2014_s28  ;;  %v1461_v55 = vld [vmem:[%s2378_s7 + $0x78] sm:$0xff] }
 0x710   : > { %804 = vxpose.xlu0.b32.start.end [1/1] (short) (narrow) %v1913_v51, 8  ;;  %v1363_v51 = vld [vmem:[%s2376_s5 + $0x18] sm:$0xff] }
 0x764   : > { %v838_v59 = vpop.permute.xlu0 %837 }
 0x765   : > { %1765 = vmatpush3.msra.mxu0 %v838_v59  ;;  %v1457_v59 = vld [vmem:[%s2378_s7 + $0x58] sm:$0xff] }
 0x766   : > { %1769 = vmatprep.subr.mxu0 %v2004_v8 }
 0x78c   : > { %v820_v60 = vpop.trf.xlu0 }
 0x78d   : > { %1767 = vmatmul.mubr.msk.f32.vlgmr.msra.gmra.mxu0 %vm517_vm2, %v820_v60  ;;  %v1456_v60 = vld [vmem:[%s2378_s7 + $0x50] sm:$0xff] }
 0x78e   : > { %1770 = vmatpush3.xpose.msk.msra.mxu0 %vm517_vm2, %v924_v61  ;;  %1771 = vmatprep.mubr.msk.f32.mxu0 %vm2005_vm1, %v2004_v8  ;;  %v1455_v61 = vld [vmem:[%s2378_s7 + $0x48] sm:$0xff] }
 0x78f   : > { %1779 = vmatprep.subr.mxu0 %v2004_v8 }
 0x791   : > { %1772 = vmatmul.mubr.msk.f32.vlgmr.msra.gmra.mxu0 %vm517_vm2, %v922_v56  ;;  %v1460_v56 = vld [vmem:[%s2378_s7 + $0x70] sm:$0xff] }
 0x792   : > { %1780 = vmatpush3.xpose.msk.msra.mxu0 %vm517_vm2, %v1130_v57  ;;  %1781 = vmatprep.mubr.msk.f32.mxu0 %vm2005_vm1, %v2004_v8  ;;  %v1459_v57 = vld [vmem:[%s2378_s7 + $0x68] sm:$0xff] }
 0x793   : > { %1789 = vmatprep.subr.mxu0 %v2004_v8 }
 0x795   : > { %1782 = vmatmul.mubr.msk.f32.vlgmr.msra.gmra.mxu0 %vm517_vm2, %v1128_v58  ;;  %v1458_v58 = vld [vmem:[%s2378_s7 + $0x60] sm:$0xff] }
 0x796   : > { %1797 = vmatprep.mubr.msk.f32.mxu0 %vm2005_vm1, %v2004_v8  ;;  %1790 = vmatpush3.msra.mxu0 %v1363_v51 }
 0x797   : > { %1791 = vmatprep.subr.mxu0 %v2004_v8 }
 0x798   : > { %1792 = vmatpush3.msra.mxu0 %v1362_v52 }
 0x799   : > { %1793 = vmatprep.subr.mxu0 %v2004_v8 }
 0x79a   : > { %1794 = vmatpush3.msra.mxu0 %v1361_v53 }
 0x79b   : > { %1795 = vmatprep.subr.mxu0 %v2004_v8 }
 0x79c   : > { %1796 = vmatpush3.msra.mxu0 %v1360_v54 }
 0x84d   : > { %v909_v62 = vpop.f32.mrf.mxu0 }
 0x84f   : > { %v1768_v63 = vpop.f32.mrf.mxu0 }
 0x850   : > { %v1453_v63 = vld [vmem:[%s2378_s7 + $0x38] sm:$0xff] }
 0x851   : > { %v995_v0 = vpop.f32.mrf.mxu0 }
 0x852   : > { %v999_v1 = vsel %vm517_vm2, %v995_v0, -inf }
 0x853   : > { %1000 = vmax.xlane.f32.xlu1 %v999_v1  ;;  %v1773_v2 = vpop.f32.mrf.mxu0  ;;  %v1451_v1 = vld [vmem:[%s2378_s7 + $0x28] sm:$0xff] }
 0x854   : > { %v1450_v2 = vld [vmem:[%s2378_s7 + $0x20] sm:$0xff] }
 0x855   : > { %v1201_v3 = vpop.f32.mrf.mxu0 }
 0x856   : > { %v1205_v4 = vsel %vm517_vm2, %v1201_v3, -inf }
 0x857   : > { %1206 = vmax.xlane.f32.xlu0 %v1205_v4  ;;  %v1783_v5 = vpop.f32.mrf.mxu0  ;;  %v1448_v4 = vld [vmem:[%s2378_s7 + $0x10] sm:$0xff] }
 0x8dc   : > { %v1001_v6 = vpop.xlane.xlu1 %1000 }
 0x8dd   : > { %v1002_v7 = vsub.f32 %v995_v0, %v1001_v6  ;;  %v1452_v0 = vld [vmem:[%s2378_s7 + $0x30] sm:$0xff] }
 0x8df   : > { %v1003_v9 = vmul.f32 1.442695, %v1002_v7 }
 0x8e0   : > { %v1207_v10 = vpop.xlane.xlu0 %1206 }
 0x8e1   : > { %1916 = vpow2.f32 %v1003_v9  ;;  %v1208_v11 = vsub.f32 %v1201_v3, %v1207_v10  ;;  %v1449_v3 = vld [vmem:[%s2378_s7 + $0x18] sm:$0xff] }
 0x8e3   : > { %v1209_v12 = vmul.f32 1.442695, %v1208_v11 }
 0x8e5   : > { %1918 = vpow2.f32 %v1209_v12 }
 0x8ee   : > { %v1917_v13 = vpop.eup %1916 }
 0x8ef   : > { %1010 = vxpose.xlu0.b32.start.end [1/1] (short) (narrow) %v1917_v13, 8  ;;  %v1005_v14 = vsel %vm517_vm2, %v1917_v13, 0.0 }
 0x8f0   : > { %1006 = vadd.xlane.f32.xlu1 %v1005_v14  ;;  %v1447_v14 = vld [vmem:[%s2378_s7 + $0x8] sm:$0xff] }
 0x8f2   : > { %v1919_v15 = vpop.eup %1918 }
 0x8f3   : > { %v1211_v17 = vsel %vm517_vm2, %v1919_v15, 0.0 }
 0x8f4   : > { %1212 = vadd.xlane.f32.xlu1 %v1211_v17 }
 0x96b   : > { %v1026_v26 = vpop.trf.xlu0 }
 0x979   : > { %v1007_v19 = vpop.xlane.xlu1 %1006 }
 0x97a   : > { %1920 = vrcp.f32 %v1007_v19 }
 0x97d   : > { %v1213_v20 = vpop.xlane.xlu1 %1212 }
 0x97e   : > { %1922 = vrcp.f32 %v1213_v20 }
 0x987   : > { %v1921_v21 = vpop.eup %1920 }
 0x988   : > { %v1009_v22 = vmul.f32 %v1921_v21, %v2174_v23 }
 0x98a   : > { %1043 = vrot.lane.b32.xlu1 %v1009_v22, %s2015_s29 }
 0x98b   : > { %v1923_v24 = vpop.eup %1922 }
 0x98c   : > { %v1215_v25 = vmul.f32 %v1923_v24, %v2174_v23 }
 0x98e   : > { %1249 = vrot.lane.b32.xlu1 %v1215_v25, %s2016_s15  ;;  %s2330_s15 = scalar_lea.hbm %s2380_s9, %s1692_s25 }
 0x9b7   : > { %1216 = vxpose.xlu1.b32.start.end [1/1] (short) (narrow) %v1919_v15, 8  ;;  %v1446_v15 = vld [vmem:[%s2378_s7] sm:$0xff] }
 0x9d5   : > { %915 = vrot.lane.b32.xlu1 %v909_v62, %s2017_s16  ;;  %v1454_v62 = vld [vmem:[%s2378_s7 + $0x40] sm:$0xff]  ;;  %s1540_s16 = scalar_lea.sflag [#allocation5], %s373_s23 }
 0x9fc   : > { %v1044_v27 = vpop.permute.xlu1 %1043 }
 0x9fd   : > { %1775 = vmatpush3.msra.mxu1 %v1044_v27 }
 0x9fe   : > { %1777 = vmatmul.mubr.msk.f32.vlgmr.msra.gmra.mxu1 %vm517_vm2, %v1026_v26  ;;  %1784 = vmatprep.subr.mxu1 %v2004_v8 }
 0x9ff   : > { %1786 = vmatprep.mubr.msk.f32.mxu1 %vm2005_vm1, %v2004_v8 }
 0xa00   : > { %v1250_v28 = vpop.permute.xlu1 %1249 }
 0xa01   : > { %1785 = vmatpush3.msra.mxu1 %v1250_v28 }
 0xa02   : > { %1800 = vmatprep.subr.mxu1 %v2004_v8 }
 0xa33   : > { %v1232_v23 = vpop.trf.xlu1 }
 0xa34   : > { %1787 = vmatmul.mubr.msk.f32.vlgmr.msra.gmra.mxu1 %vm517_vm2, %v1232_v23 }
 0xa35   : > { %1832 = vmatprep.mubr.msk.f32.mxu1 %vm2005_vm1, %v2004_v8  ;;  %1801 = vmatpush3.msra.mxu1 %v1461_v55 }
 0xa36   : > { %1802 = vmatprep.subr.mxu1 %v2004_v8 }
 0xa37   : > { %1803 = vmatpush3.msra.mxu1 %v1460_v56 }
 0xa38   : > { %1804 = vmatprep.subr.mxu1 %v2004_v8 }
 0xa39   : > { %1805 = vmatpush3.msra.mxu1 %v1459_v57 }
 0xa3a   : > { %1806 = vmatprep.subr.mxu1 %v2004_v8 }
 0xa3b   : > { %1807 = vmatpush3.msra.mxu1 %v1458_v58 }
 0xa3c   : > { %1808 = vmatprep.subr.mxu1 %v2004_v8 }
 0xa3d   : > { %1809 = vmatpush3.msra.mxu1 %v1457_v59 }
 0xa3e   : > { %1810 = vmatprep.subr.mxu1 %v2004_v8 }
 0xa3f   : > { %1811 = vmatpush3.msra.mxu1 %v1456_v60 }
 0xa40   : > { %1812 = vmatprep.subr.mxu1 %v2004_v8 }
 0xa41   : > { %1813 = vmatpush3.msra.mxu1 %v1455_v61 }
 0xa42   : > { %1814 = vmatprep.subr.mxu1 %v2004_v8 }
 0xa43   : > { %1815 = vmatpush3.msra.mxu1 %v1454_v62 }
 0xa44   : > { %1816 = vmatprep.subr.mxu1 %v2004_v8 }
 0xa45   : > { %1817 = vmatpush3.msra.mxu1 %v1453_v63 }
 0xa46   : > { %1818 = vmatprep.subr.mxu1 %v2004_v8 }
 0xa47   : > { %v916_v30 = vpop.permute.xlu1 %915  ;;  %1819 = vmatpush3.msra.mxu1 %v1452_v0 }
 0xa48   : > { %v918_v31 = vadd.f32 %v916_v30, %v913_v29  ;;  %1820 = vmatprep.subr.mxu1 %v2004_v8 }
 0xa49   : > { %1821 = vmatpush3.msra.mxu1 %v1451_v1 }
 0xa4a   : > { %920 = vst.msk [vmem:[#allocation2] sm:$0xff] %vm919_vm3, %v918_v31  ;;  %1822 = vmatprep.subr.mxu1 %v2004_v8 }
 0xa4b   : > { %1823 = vmatpush3.msra.mxu1 %v1450_v2 }
 0xa4c   : > { %1824 = vmatprep.subr.mxu1 %v2004_v8 }
 0xa4d   : > { %1825 = vmatpush3.msra.mxu1 %v1449_v3 }
 0xa4e   : > { %1826 = vmatprep.subr.mxu1 %v2004_v8 }
 0xa4f   : > { %1827 = vmatpush3.msra.mxu1 %v1448_v4 }
 0xa50   : > { %1828 = vmatprep.subr.mxu1 %v2004_v8 }
 0xa51   : > { %v1119_v36 = vld [vmem:[#allocation2] sm:$0xff]  ;;  %1829 = vmatpush3.msra.mxu1 %v1447_v14 }
 0xa52   : > { %1830 = vmatprep.subr.mxu1 %v2004_v8 }
 0xa53   : > { %1831 = vmatpush3.msra.mxu1 %v1446_v15 }
 0xabe   : > { %v1115_v32 = vpop.f32.mrf.mxu1 }
 0xabf   : > { %1121 = vrot.lane.b32.xlu0 %v1115_v32, %s2018_s18  ;;  %s1926_s18 = scalar_lea.vmem %s1554_s27, 128 }
 0xac0   : > { %v1778_v33 = vpop.f32.mrf.mxu1  ;;  %p1927_p12 = scmp.ne.s32.totalorder %s1554_s27, %s1926_s18 }
 0xac2   : > { %p1928_p13 = pnand %p1927_p12, %p2111_p4 }
 0xac4   : > { %p1929_p0 = pneg %p1928_p13 }
 0xaf4   : > { %v1321_v34 = vpop.f32.mrf.mxu1 }
 0xaf5   : > { %1327 = vrot.lane.b32.xlu1 %v1321_v34, %s2019_s20  ;;  %s2020_s20 = smov [#allocation4]  }
 0xaf6   : > { %v1788_v35 = vpop.f32.mrf.mxu1  ;;  %s1930_s0 = sshll.u32 %s2020_s20, 4  ;;  %s1931_s0 = int_to_ptr.vmem [resolvable:$false] %s1930_s0 }
 0xaf7   : > { %s1932_s12 = scalar_lea.vmem %s1931_s0, 256  ;;  %p1933_p1 = scmp.lt.s32.totalorder %s1554_s27, %s1931_s0 }
 0xaf8   : > { %p1934_p2 = scmp.lt.s32.totalorder %s1932_s12, %s1926_s18 }
 0xafa   : > { %p1935_p3 = por %p1934_p2, %p1933_p1 }
 0xafc   : > { %p1936_p5 = pnand %p1935_p3, %p1929_p0 }
 0xb31   : > { %v1122_v37 = vpop.permute.xlu0 %1121 }
 0xb32   : > { %v1124_v38 = vadd.f32 %v1122_v37, %v1119_v36 }
 0xb34   : > { %1126 = vst.msk [vmem:[#allocation2] sm:$0xff] %vm1125_vm4, %v1124_v38 }
 0xb3b   : > { %v1325_v39 = vld [vmem:[#allocation2] sm:$0xff] }
 0xb67   : > { %v1328_v40 = vpop.permute.xlu1 %1327 }
 0xb68   : > { %v1330_v41 = vadd.f32 %v1328_v40, %v1325_v39 }
 0xb6a   : > { %1332 = vst.msk [vmem:[#allocation2] sm:$0xff] %vm1331_vm5, %v1330_v41 }
 0xb71   : > { %v1333_v43 = vld [vmem:[#allocation2] sm:$0xff] }
 0xb72   : > { %v1334_v44 = vsel %vm400_vm0, %v1333_v43, 0.0  ;;  %v1357_v45 = vadd.f32 %v1688_v42, %v1333_v43 }
 0xb73   : > { %1335 = vadd.xlane.f32.xlu1 %v1334_v44 }
 0xb74   : > { %1358 = vst.msk [vmem:[#allocation2] sm:$0xff] %vm400_vm0, %v1357_v45 }
 0xb7b   : > { %v1445_v20 = vld [vmem:[#allocation2] sm:$0xff] }
 0xbfc   : > { %v1336_v46 = vpop.xlane.xlu1 %1335 }
 0xbfd   : > { %v1337_v47 = vmul.f32 0.03125, %v1336_v46 }
 0xbff   : > { %v1338_v48 = vsub.f32 %v1333_v43, %v1337_v47 }
 0xc01   : > { %v1339_v49 = vmul.f32 %v1338_v48, %v1338_v48 }
 0xc03   : > { %v1340_v50 = vsel %vm400_vm0, %v1339_v49, 0.0 }
 0xc04   : > { %1341 = vadd.xlane.f32.xlu0 %v1340_v50 }
 0xc8d   : > { %v1342_v5 = vpop.xlane.xlu0 %1341 }
 0xc8e   : > { %v1343_v6 = vmul.f32 0.03125, %v1342_v5 }
 0xc90   : > { %v1344_v7 = vadd.f32 1e-05, %v1343_v6 }
 0xc92   : > { %1924 = vrsqrt.f32 %v1344_v7 }
 0xc9f   : > { %v1925_v9 = vpop.eup %1924 }
 0xca0   : > { %v1346_v10 = vmul.f32 %v1925_v9, %v1338_v48 }
 0xca2   : > { %v1347_v11 = vmul.f32 %v2159_v16, %v1346_v10  ;;  %v1689_v16 = vld [vmem:[%s2377_s6] ss:$0 sm:$0xff] }
 0xca4   : > { %v1348_v12 = vadd.f32 %v2164_v18, %v1347_v11 }
 0xca6   : > { %1349 = vst.msk [vmem:[#allocation3] sm:$0xff] %vm400_vm0, %v1348_v12 }
 0xcad   : > { %v1359_v13 = vld [vmem:[#allocation3] sm:$0xff] }
 0xcae   : > { %1798 = vmatmul.mubr.msk.f32.vlgmr.msra.gmra.mxu0 %vm400_vm0, %v1359_v13 }
 0xd6e   : > { %v1441_v18 = vpop.f32.mrf.mxu0 }
 0xd6f   : > { %v1442_v17 = vadd.f32 %v1689_v16, %v1441_v18 }
 0xd70   : > { %v1799_v19 = vpop.f32.mrf.mxu0 }
 0xd71   : > { %1833 = vmatmul.mubr.f32.vlgmr.msra.gmra.mxu1 %v1442_v17 }
 0xe31   : > { %v1528_v21 = vpop.f32.mrf.mxu1 }
 0xe32   : > { %v1532_v22 = vadd.f32 %v1528_v21, %v1445_v20 }
 0xe33   : > { %v1834_v8 = vpop.f32.mrf.mxu1 }
 0xe34   : > { %1533 = vst.msk [vmem:[#allocation2] sm:$0xff] %vm400_vm0, %v1532_v22 }
 0xe3b   : > { %v1537_v24 = vld [vmem:[#allocation2] sm:$0xff] }
 0xe3c   : > { %1538 = vst.msk [vmem:[%s375_s26] sm:$0xff] %vm400_vm0, %v1537_v24 }
 0xe3d   : > { %1939 = shalt.err (!%p1936_p5)
}
 0xe3e   : > { %s1940_s24 = scalar_lea.hbm %s2330_s15, 128  ;;  %s1944_s26 = scalar_lea.hbm %s2380_s9, 256 }
 0xe3f   : > { %p1941_p6 = scmp.ne.s32.totalorder %s2330_s15, %s1940_s24  ;;  %p1945_p10 = scmp.lt.s32.totalorder %s2330_s15, %s2380_s9 }
 0xe40   : > { %p1946_p11 = scmp.lt.s32.totalorder %s1944_s26, %s1940_s24 }
 0xe41   : > { %p1942_p7 = pnand %p1941_p6, %p2111_p4 }
 0xe42   : > { %p1947_p12 = por %p1946_p11, %p1945_p10 }
 0xe43   : > { %p1943_p9 = pneg %p1942_p7 }
 0xe45   : > { %p1948_p13 = pnand %p1947_p12, %p1943_p9 }
 0xe47   : > { %1951 = shalt.err (!%p1948_p13)
}
 0xe48   : > { %1835 = dma.vmem_to_hbm [thread:$0]  (%p2111_p4), %s1554_s27, 128, %s2330_s15, %s1540_s16  }
 0xe49 PF: > { %p1841_p0 = scmp.ge.s32.totalorder %s2002_s14, 2  ;;  %s1565_s0 = sand.u32 1, %s1982_s30  }
 0xe4a   : > { %s1566_s18 = scalar_lea.sflag [#allocation5], %s1565_s0 }
 0xe4b   : > { %p1838_p1 = pnand %p1841_p0, %p2118_p8 }
 0xe4d   : > { %p1839_p2 = pneg %p1838_p1 }
 0xe4f   : > { %1977 = dma.done.wait (%p1839_p2), %s1566_s18, 128  }
 0xe50   : > { %1979 = vsyncadd (%p1839_p2), %s1566_s18, 4294967168  ;;  %s22_s14 = sadd.s32 1, %s2002_s14   ;;  %s2385_s30 = smov %s1986_s10 }
 0xe51   : > { %p19_p3 = scmp.ge.s32.totalorder %s22_s14, 4   ;;  %s2386_s10 = smov %s1990_s11 }
 0xe52   : > { %s2387_s11 = smov %s2124_s22  ;;  %s2388_s12 = smov %s1998_s13 }
 0xe53   : > { %s2389_s13 = smov %s2391_s17  ;;  %21 = sbr.rel (!%p19_p3) target bundleno = 6 (0x6), region = 108 }
 0xe58   :  { %1571 = vsyncpa [#allocation5], 1 }
 0xe59   :  { %1573 = vsyncpa [#allocation5 + $0x1], 1 }

// kernel: tpu_custom_call.1
= control target key start
LH: loop header
LB: loop body
LE: loop exit
PB: predicated region body
PF: predicated region fallthrough
CT: control target
= control target key end

     0   :  { %s2257_s0 = inlined_call_operand.vmem [shape: f32[2,8,32], index: 0, kind: input, shape index: {}]   ;;  %s2258_s1 = inlined_call_operand.vmem [shape: f32[1,32], index: 1, kind: input, shape index: {}]   ;;  %s2259_s2 = inlined_call_operand.vmem [shape: f32[1,32], index: 2, kind: input, shape index: {}]   ;;  %s2260_s3 = inlined_call_operand.vmem [shape: f32[32,96], index: 3, kind: input, shape index: {}]   ;;  %s2261_s4 = inlined_call_operand.vmem [shape: f32[1,96], index: 4, kind: input, shape index: {}]   ;;  %s2262_s5 = inlined_call_operand.vmem [shape: f32[32,128], index: 5, kind: input, shape index: {}]   ;;  %s2263_s6 = inlined_call_operand.vmem [shape: f32[1,128], index: 6, kind: input, shape index: {}]   ;;  %s2264_s7 = inlined_call_operand.vmem [shape: f32[128,32], index: 7, kind: input, shape index: {}]   ;;  %s2265_s8 = inlined_call_operand.vmem [shape: f32[1,32], index: 8, kind: input, shape index: {}]   ;;  %s2266_s9 = inlined_call_operand.hbm [shape: f32[2,8,32], index: 9, kind: output, shape index: {}]  }
   0x1   :  { %2267 = sst [smem:[#allocation7_spill]] %s2257_s0 }
   0x2   :  { %14 = vsyncpa [#allocation5], 0 }
   0x3   :  { %16 = vsyncpa [#allocation5 + $0x1], 0  ;;  %s1971_s30 = smov 0   ;;  %s1973_s10 = smov 0  }
   0x4   :  { %s1975_s11 = smov 0   ;;  %s1977_s12 = smov 0  }
   0x5   :  { %s1979_s13 = smov 0   ;;  %s1981_s14 = smov 0  }
   0x6 LB: > { %s1562_s15 = sadd.s32 4294967295, %s1902_s14   ;;  %s1563_s16 = sadd.s32 4294967294, %s1902_s14   ;;  %s1902_s14 = sphi %s1981_s14, %s22_s14   ;;  %s1898_s13 = sphi %s1979_s13, %s2275_s13   ;;  %s1894_s12 = sphi %s1977_s12, %s2274_s12   ;;  %s1890_s11 = sphi %s1975_s11, %s2273_s11   ;;  %s1886_s10 = sphi %s1973_s10, %s2272_s10   ;;  %s1882_s30 = sphi %s1971_s30, %s2271_s30  }
   0x7   : > { %s34_s17 = sadd.s32 1, %s1898_s13  ;;  %s250_s18 = sadd.s32 1, %s1890_s11 }
   0x8   : > { %p36_p0 = scmp.ge.s32.totalorder %s34_s17, 2  ;;  %p260_p1 = scmp.ne.s32.totalorder %s1890_s11, %s1886_s10 }
   0x9   : > { %p261_p2 = scmp.eq.s32.totalorder %s1562_s15, 1  ;;  %p266_p3 = scmp.ne.s32.totalorder %s1886_s10, %s1882_s30 }
   0xa   : > { %s2277_s17 = smov (%p36_p0, %s34_s17), 0  ;;  %p267_p5 = scmp.eq.s32.totalorder %s1563_s16, 1 }
   0xb   : > { %p2011_p4 = por %p261_p2, %p260_p1  ;;  %s247_s20 = ssub.s32 %s1898_s13, %s2277_s17 }
   0xc   : > { %p1569_p6 = scmp.ge.s32.totalorder %s1902_s14, 1  ;;  %p248_p7 = scmp.eq.s32.totalorder %s247_s20, 0 }
   0xd   : > { %p2018_p8 = por %p267_p5, %p266_p3  ;;  %p329_p9 = scmp.lt.s32.totalorder %s1902_s14, 3 }
   0xe   : > { %s2024_s22 = scalar_select %p248_p7, %s1890_s11, %s250_s18  }
   0xf   : > { %p330_p10 = pnand %p1569_p6, %p329_p9 }
  0x10   : > { %p376_p11 = scmp.lt.s32.totalorder (!%p330_p10), %s1894_s12, 1  ;;  %s2270_s0 = sld [smem:[#allocation7_spill]] (!%p330_p10) }
  0x11   : > { %333 = sbr.rel (%p330_p10) target bundleno = 2470 (0x9a6), region = 56  ;;  %s1906_s16 = smov (!%p330_p10), 88  }
  0x12   : > { %s1907_s18 = smov (!%p330_p10), 96   ;;  %s1908_s20 = smov (!%p330_p10), 48  }
  0x13   : > { %s1911_s25 = smov (!%p330_p10), 56   ;;  %s1912_s26 = smov (!%p330_p10), 80  }
  0x14   : > { %s1914_s28 = smov (!%p330_p10), 72   ;;  %s1915_s29 = smov (!%p330_p10), 104  }
  0x15   : > { %s1916_s15 = smov (!%p330_p10), 40  }
  0x16   : > { %s377_s23 = scalar_select %p376_p11, %s1894_s12, 1  ;;  %vm400_vm0 = vcmask 261120   ;;  %v432_v7 = vld [vmem:[%s2260_s3 + $0x18] sm:$0xff]  ;;  %v1904_v8 = vmov 0.0   ;;  %v431_v9 = vld [vmem:[%s2260_s3 + $0x10] sm:$0xff]  ;;  %vm1905_vm1 = vmmov 0  }
  0x17   : > { %1638 = vmatprep.subr.mxu0 %v1904_v8  ;;  %1646 = vmatprep.mubr.msk.f32.mxu0 %vm1905_vm1, %v1904_v8  ;;  %v430_v10 = vld [vmem:[%s2260_s3 + $0x8] sm:$0xff]  ;;  %v429_v11 = vld [vmem:[%s2260_s3] sm:$0xff]  ;;  %vm517_vm2 = vcmask 64512   ;;  %vm869_vm3 = vcmask 130112   ;;  %vm1050_vm4 = vcmask 195712   ;;  %vm1231_vm5 = vcmask 261312  }
  0x18   : > { %s1571_s24 = sshll.u32 %s377_s23, 3  ;;  %1639 = vmatpush3.msra.mxu0 %v432_v7  ;;  %1674 = vmatprep.subr.mxu1 %v1904_v8  ;;  %v2059_v16 = vld [vmem:[%s2258_s1] ss:$0 sm:$0xff]  ;;  %s1909_s23 = smov 64  }
  0x19   : > { %s379_s27 = scalar_lea.vmem %s2270_s0, %s1571_s24  ;;  %1640 = vmatprep.subr.mxu0 %v1904_v8  ;;  %1676 = vmatprep.mubr.msk.f32.mxu1 %vm1905_vm1, %v1904_v8  ;;  %v2064_v18 = vld [vmem:[%s2259_s2] ss:$0 sm:$0xff]  ;;  %s1910_s24 = smov 120  }
  0x1a   : > { %v397_v0 = vld [vmem:[%s379_s27] sm:$0xff]  ;;  %1641 = vmatpush3.msra.mxu0 %v431_v9  ;;  %s1913_s27 = smov 112  }
  0x1b   : > { %v401_v1 = vsel %vm400_vm0, %v397_v0, 0.0  ;;  %513 = vst.msk [vmem:[#allocation2] sm:$0xff] %vm400_vm0, %v397_v0  ;;  %1642 = vmatprep.subr.mxu0 %v1904_v8  ;;  %v1574_v21 = vld [vmem:[%s2261_s4] ss:$0 sm:$0xff] }
  0x1c   : > { %402 = vadd.xlane.f32.xlu0 %v401_v1  ;;  %1643 = vmatpush3.msra.mxu0 %v430_v10 }
  0x1d   : > { %1644 = vmatprep.subr.mxu0 %v1904_v8 }
  0x1e   : > { %1645 = vmatpush3.msra.mxu0 %v429_v11 }
  0x1f   : > { %1649 = vmatprep.subr.mxu0 %v1904_v8 }
  0x22   : > { %v687_v52 = vld [vmem:[#allocation2] sm:$0xff] }
  0xa5   : > { %v403_v2 = vpop.xlane.xlu0 %402 }
  0xa6   : > { %v405_v3 = vmul.f32 0.03125, %v403_v2 }
  0xa8   : > { %v406_v4 = vsub.f32 %v397_v0, %v405_v3 }
  0xaa   : > { %v407_v5 = vmul.f32 %v406_v4, %v406_v4 }
  0xac   : > { %v408_v6 = vsel %vm400_vm0, %v407_v5, 0.0 }
  0xad   : > { %409 = vadd.xlane.f32.xlu0 %v408_v6 }
 0x136   : > { %v410_v12 = vpop.xlane.xlu0 %409 }
 0x137   : > { %v411_v13 = vmul.f32 0.03125, %v410_v12 }
 0x139   : > { %v412_v14 = vadd.f32 1e-05, %v411_v13 }
 0x13b   : > { %1806 = vrsqrt.f32 %v412_v14 }
 0x148   : > { %v1807_v15 = vpop.eup %1806 }
 0x149   : > { %v414_v17 = vmul.f32 %v1807_v15, %v406_v4 }
 0x14b   : > { %v421_v19 = vmul.f32 %v2059_v16, %v414_v17 }
 0x14d   : > { %v428_v20 = vadd.f32 %v2064_v18, %v421_v19 }
 0x14f   : > { %1647 = vmatmul.mubr.msk.f32.vlgmr.msra.gmra.mxu0 %vm400_vm0, %v428_v20 }
 0x150   : > { %1651 = vmatprep.mubr.msk.f32.mxu0 %vm1905_vm1, %v1904_v8 }
 0x20f   : > { %v509_v22 = vpop.f32.mrf.mxu0 }
 0x210   : > { %v510_v23 = vadd.f32 %v1574_v21, %v509_v22 }
 0x211   : > { %v1648_v24 = vpop.f32.mrf.mxu0 }
 0x212   : > { %692 = vrot.lane.b32.xlu0 %v510_v23, %s1906_s16  ;;  %515 = vrot.lane.b32.xlu1 %v510_v23, %s1907_s18  ;;  %s1917_s16 = smov 8   ;;  %s1918_s18 = smov 16  }
 0x216   : > { %968 = vrot.lane.b32.xlu0 %v510_v23, %s1908_s20  ;;  %611 = vrot.lane.b32.xlu1 %v510_v23, %s1909_s23  ;;  %s1919_s20 = smov 24   ;;  %s373_s23 = sand.u32 1, %s1886_s10  }
 0x21a   : > { %690 = vrot.lane.b32.xlu1 %v510_v23, %s1910_s24  ;;  %s1570_s24 = sshll.u32 %s373_s23, 3 }
 0x21e   : > { %787 = vrot.lane.b32.xlu1 %v510_v23, %s1911_s25  ;;  %s1592_s25 = sshll.u32 %s1894_s12, 7 }
 0x222   : > { %873 = vrot.lane.b32.xlu1 %v510_v23, %s1912_s26  ;;  %s375_s26 = scalar_lea.vmem [#allocation4], %s1570_s24 }
 0x226   : > { %871 = vrot.lane.b32.xlu1 %v510_v23, %s1913_s27  ;;  %s1453_s27 = sshll.u32 %s375_s26, 4  ;;  %s1454_s27 = int_to_ptr.vmem [resolvable:$true] %s1453_s27 }
 0x22a   : > { %1054 = vrot.lane.b32.xlu1 %v510_v23, %s1914_s28 }
 0x22e   : > { %1052 = vrot.lane.b32.xlu1 %v510_v23, %s1915_s29 }
 0x232   : > { %1149 = vrot.lane.b32.xlu1 %v510_v23, %s1916_s15  ;;  %s2216_s15 = scalar_lea.hbm %s2266_s9, %s1592_s25 }
 0x284   : > { %v693_v25 = vpop.permute.xlu0 %692  ;;  %v516_v26 = vpop.permute.xlu1 %515 }
 0x285   : > { %1650 = vmatpush3.xpose.msk.msra.mxu0 %vm517_vm2, %v516_v26 }
 0x286   : > { %1654 = vmatprep.subr.mxu0 %v1904_v8 }
 0x288   : > { %v969_v27 = vpop.permute.xlu0 %968  ;;  %1652 = vmatmul.mubr.msk.f32.vlgmr.msra.gmra.mxu0 %vm517_vm2, %v510_v23  ;;  %v612_v28 = vpop.permute.xlu1 %611 }
 0x289   : > { %1655 = vmatpush3.msra.mxu0 %v612_v28  ;;  %1675 = vmatpush3.msra.mxu1 %v969_v27 }
 0x28a   : > { %1656 = vmatprep.mubr.msk.f32.mxu0 %vm1905_vm1, %v1904_v8  ;;  %1659 = vmatprep.subr.mxu0 %v1904_v8 }
 0x28b   : > { %1684 = vmatprep.subr.mxu1 %v1904_v8 }
 0x28c   : > { %v691_v49 = vpop.permute.xlu1 %690 }
 0x290   : > { %v788_v51 = vpop.permute.xlu1 %787 }
 0x294   : > { %v874_v12 = vpop.permute.xlu1 %873 }
 0x298   : > { %v872_v13 = vpop.permute.xlu1 %871 }
 0x29c   : > { %v1055_v17 = vpop.permute.xlu1 %1054 }
 0x2a0   : > { %v1053_v19 = vpop.permute.xlu1 %1052 }
 0x348   : > { %v588_v29 = vpop.f32.mrf.mxu0 }
 0x349   : > { %v592_v30 = vsel %vm517_vm2, %v588_v29, -inf }
 0x34a   : > { %v593_v31 = vrot.slane %v592_v30, 4  ;;  %v1653_v32 = vpop.f32.mrf.mxu0 }
 0x34c   : > { %v594_v33 = vmax.f32 %v592_v30, %v593_v31 }
 0x34e   : > { %v595_v34 = vrot.slane %v594_v33, 2 }
 0x350   : > { %v596_v35 = vmax.f32 %v594_v33, %v595_v34 }
 0x352   : > { %v597_v36 = vrot.slane %v596_v35, 1 }
 0x354   : > { %v598_v37 = vmax.f32 %v596_v35, %v597_v36 }
 0x356   : > { %v599_v38 = vsub.f32 %v588_v29, %v598_v37 }
 0x358   : > { %v600_v39 = vmul.f32 1.442695, %v599_v38 }
 0x35a   : > { %1808 = vpow2.f32 %v600_v39 }
 0x367   : > { %v1809_v40 = vpop.eup %1808 }
 0x368   : > { %v602_v41 = vsel %vm517_vm2, %v1809_v40, 0.0 }
 0x369   : > { %v603_v42 = vrot.slane %v602_v41, 4 }
 0x36b   : > { %v604_v43 = vadd.f32 %v603_v42, %v602_v41 }
 0x36d   : > { %v605_v44 = vrot.slane %v604_v43, 2 }
 0x36f   : > { %v606_v45 = vadd.f32 %v605_v44, %v604_v43 }
 0x371   : > { %v607_v46 = vrot.slane %v606_v45, 1 }
 0x373   : > { %v608_v47 = vadd.f32 %v607_v46, %v606_v45 }
 0x375   : > { %1810 = vrcp.f32 %v608_v47 }
 0x382   : > { %v1811_v48 = vpop.eup %1810 }
 0x383   : > { %v610_v50 = vmul.f32 %v1811_v48, %v1809_v40 }
 0x385   : > { %1657 = vmatmul.mubr.msk.f32.vlgmr.msra.gmra.mxu0 %vm517_vm2, %v610_v50 }
 0x386   : > { %1660 = vmatpush3.xpose.msk.msra.mxu0 %vm517_vm2, %v693_v25  ;;  %1661 = vmatprep.mubr.msk.f32.mxu0 %vm1905_vm1, %v1904_v8 }
 0x387   : > { %1664 = vmatprep.subr.mxu0 %v1904_v8 }
 0x389   : > { %1662 = vmatmul.mubr.msk.f32.vlgmr.msra.gmra.mxu0 %vm517_vm2, %v691_v49 }
 0x38a   : > { %1665 = vmatpush3.msra.mxu0 %v788_v51  ;;  %1666 = vmatprep.mubr.msk.f32.mxu0 %vm1905_vm1, %v1904_v8 }
 0x38b   : > { %1669 = vmatprep.subr.mxu0 %v1904_v8 }
 0x445   : > { %v683_v53 = vpop.f32.mrf.mxu0 }
 0x446   : > { %v688_v54 = vadd.f32 %v687_v52, %v683_v53 }
 0x447   : > { %v1658_v55 = vpop.f32.mrf.mxu0 }
 0x448   : > { %689 = vst.msk [vmem:[#allocation2] sm:$0xff] %vm517_vm2, %v688_v54 }
 0x449   : > { %v764_v56 = vpop.f32.mrf.mxu0 }
 0x44a   : > { %v768_v57 = vsel %vm517_vm2, %v764_v56, -inf }
 0x44b   : > { %v769_v58 = vrot.slane %v768_v57, 4  ;;  %v1663_v59 = vpop.f32.mrf.mxu0 }
 0x44d   : > { %v770_v60 = vmax.f32 %v768_v57, %v769_v58 }
 0x44f   : > { %v771_v61 = vrot.slane %v770_v60, 2 }
 0x451   : > { %v772_v62 = vmax.f32 %v770_v60, %v771_v61 }
 0x453   : > { %v773_v63 = vrot.slane %v772_v62, 1 }
 0x455   : > { %v774_v0 = vmax.f32 %v772_v62, %v773_v63  ;;  %v1150_v62 = vpop.permute.xlu1 %1149 }
 0x457   : > { %v775_v1 = vsub.f32 %v764_v56, %v774_v0 }
 0x459   : > { %v776_v2 = vmul.f32 1.442695, %v775_v1  ;;  %v863_v1 = vld [vmem:[#allocation2] sm:$0xff] }
 0x45b   : > { %1812 = vpow2.f32 %v776_v2 }
 0x468   : > { %v1813_v3 = vpop.eup %1812 }
 0x469   : > { %v778_v4 = vsel %vm517_vm2, %v1813_v3, 0.0 }
 0x46a   : > { %v779_v5 = vrot.slane %v778_v4, 4 }
 0x46c   : > { %v780_v6 = vadd.f32 %v779_v5, %v778_v4 }
 0x46e   : > { %v781_v7 = vrot.slane %v780_v6, 2 }
 0x470   : > { %v782_v9 = vadd.f32 %v781_v7, %v780_v6 }
 0x472   : > { %v783_v10 = vrot.slane %v782_v9, 1 }
 0x474   : > { %v784_v11 = vadd.f32 %v783_v10, %v782_v9 }
 0x476   : > { %1814 = vrcp.f32 %v784_v11 }
 0x483   : > { %v1815_v14 = vpop.eup %1814 }
 0x484   : > { %v786_v15 = vmul.f32 %v1815_v14, %v1813_v3 }
 0x486   : > { %1667 = vmatmul.mubr.msk.f32.vlgmr.msra.gmra.mxu0 %vm517_vm2, %v786_v15  ;;  %v1588_v15 = vld [vmem:[%s2265_s8] ss:$0 sm:$0xff] }
 0x487   : > { %1670 = vmatpush3.xpose.msk.msra.mxu0 %vm517_vm2, %v874_v12  ;;  %1671 = vmatprep.mubr.msk.f32.mxu0 %vm1905_vm1, %v1904_v8 }
 0x488   : > { %1679 = vmatprep.subr.mxu0 %v1904_v8 }
 0x48a   : > { %1672 = vmatmul.mubr.msk.f32.vlgmr.msra.gmra.mxu0 %vm517_vm2, %v872_v13 }
 0x48b   : > { %1680 = vmatpush3.xpose.msk.msra.mxu0 %vm517_vm2, %v1055_v17  ;;  %1681 = vmatprep.mubr.msk.f32.mxu0 %vm1905_vm1, %v1904_v8 }
 0x48c   : > { %1689 = vmatprep.subr.mxu0 %v1904_v8 }
 0x48e   : > { %1682 = vmatmul.mubr.msk.f32.vlgmr.msra.gmra.mxu0 %vm517_vm2, %v1053_v19 }
 0x48f   : > { %1697 = vmatprep.mubr.msk.f32.mxu0 %vm1905_vm1, %v1904_v8 }
 0x546   : > { %v859_v20 = vpop.f32.mrf.mxu0 }
 0x547   : > { %865 = vrot.lane.b32.xlu0 %v859_v20, %s1917_s16  ;;  %s1440_s16 = scalar_lea.sflag [#allocation5], %s373_s23 }
 0x548   : > { %v1668_v21 = vpop.f32.mrf.mxu0 }
 0x54a   : > { %v945_v22 = vpop.f32.mrf.mxu0 }
 0x54b   : > { %v949_v23 = vsel %vm517_vm2, %v945_v22, -inf }
 0x54c   : > { %v950_v24 = vrot.slane %v949_v23, 4  ;;  %v1673_v25 = vpop.f32.mrf.mxu0 }
 0x54e   : > { %v951_v26 = vmax.f32 %v949_v23, %v950_v24  ;;  %v1126_v27 = vpop.f32.mrf.mxu0 }
 0x54f   : > { %v1130_v28 = vsel %vm517_vm2, %v1126_v27, -inf }
 0x550   : > { %v952_v29 = vrot.slane %v951_v26, 2  ;;  %v1131_v30 = vrot.slane %v1130_v28, 4  ;;  %v1683_v31 = vpop.f32.mrf.mxu0 }
 0x551   : > { %v1360_v31 = vld [vmem:[%s2264_s7 + $0x70] sm:$0xff] }
 0x552   : > { %v953_v32 = vmax.f32 %v951_v26, %v952_v29  ;;  %v1132_v33 = vmax.f32 %v1130_v28, %v1131_v30  ;;  %v1263_v26 = vld [vmem:[%s2262_s5 + $0x18] sm:$0xff]  ;;  %v1261_v28 = vld [vmem:[%s2262_s5 + $0x8] sm:$0xff]  ;;  %v1260_v29 = vld [vmem:[%s2262_s5] sm:$0xff] }
 0x553   : > { %1690 = vmatpush3.msra.mxu0 %v1263_v26  ;;  %v1361_v30 = vld [vmem:[%s2264_s7 + $0x78] sm:$0xff] }
 0x554   : > { %v954_v34 = vrot.slane %v953_v32, 1  ;;  %v1133_v35 = vrot.slane %v1132_v33, 2  ;;  %1691 = vmatprep.subr.mxu0 %v1904_v8 }
 0x556   : > { %v955_v36 = vmax.f32 %v953_v32, %v954_v34  ;;  %v1134_v37 = vmax.f32 %v1132_v33, %v1133_v35  ;;  %v1359_v32 = vld [vmem:[%s2264_s7 + $0x68] sm:$0xff]  ;;  %v1358_v33 = vld [vmem:[%s2264_s7 + $0x60] sm:$0xff]  ;;  %v1357_v34 = vld [vmem:[%s2264_s7 + $0x58] sm:$0xff] }
 0x557   : > { %v1356_v35 = vld [vmem:[%s2264_s7 + $0x50] sm:$0xff] }
 0x558   : > { %v956_v38 = vsub.f32 %v945_v22, %v955_v36  ;;  %v1135_v39 = vrot.slane %v1134_v37, 1  ;;  %v1355_v36 = vld [vmem:[%s2264_s7 + $0x48] sm:$0xff] }
 0x55a   : > { %v957_v40 = vmul.f32 1.442695, %v956_v38  ;;  %v1136_v41 = vmax.f32 %v1134_v37, %v1135_v39  ;;  %v1354_v37 = vld [vmem:[%s2264_s7 + $0x40] sm:$0xff]  ;;  %v1353_v38 = vld [vmem:[%s2264_s7 + $0x38] sm:$0xff]  ;;  %v1352_v39 = vld [vmem:[%s2264_s7 + $0x30] sm:$0xff] }
 0x55c   : > { %1816 = vpow2.f32 %v957_v40  ;;  %v1137_v42 = vsub.f32 %v1126_v27, %v1136_v41  ;;  %v1262_v27 = vld [vmem:[%s2262_s5 + $0x10] sm:$0xff]  ;;  %v1351_v40 = vld [vmem:[%s2264_s7 + $0x28] sm:$0xff]  ;;  %v1350_v41 = vld [vmem:[%s2264_s7 + $0x20] sm:$0xff] }
 0x55d   : > { %1692 = vmatpush3.msra.mxu0 %v1262_v27 }
 0x55e   : > { %v1138_v43 = vmul.f32 1.442695, %v1137_v42  ;;  %1693 = vmatprep.subr.mxu0 %v1904_v8  ;;  %v1349_v42 = vld [vmem:[%s2264_s7 + $0x18] sm:$0xff] }
 0x55f   : > { %1694 = vmatpush3.msra.mxu0 %v1261_v28 }
 0x560   : > { %1818 = vpow2.f32 %v1138_v43  ;;  %1695 = vmatprep.subr.mxu0 %v1904_v8  ;;  %v1348_v43 = vld [vmem:[%s2264_s7 + $0x10] sm:$0xff] }
 0x561   : > { %1696 = vmatpush3.msra.mxu0 %v1260_v29 }
 0x569   : > { %v1817_v44 = vpop.eup %1816 }
 0x56a   : > { %v959_v45 = vsel %vm517_vm2, %v1817_v44, 0.0 }
 0x56b   : > { %v960_v46 = vrot.slane %v959_v45, 4 }
 0x56d   : > { %v1819_v47 = vpop.eup %1818  ;;  %v961_v48 = vadd.f32 %v960_v46, %v959_v45 }
 0x56e   : > { %v1140_v49 = vsel %vm517_vm2, %v1819_v47, 0.0 }
 0x56f   : > { %v962_v50 = vrot.slane %v961_v48, 2  ;;  %v1141_v51 = vrot.slane %v1140_v49, 4 }
 0x571   : > { %v963_v52 = vadd.f32 %v962_v50, %v961_v48  ;;  %v1142_v53 = vadd.f32 %v1141_v51, %v1140_v49 }
 0x573   : > { %v964_v54 = vrot.slane %v963_v52, 1  ;;  %v1143_v55 = vrot.slane %v1142_v53, 2 }
 0x575   : > { %v965_v56 = vadd.f32 %v964_v54, %v963_v52  ;;  %v1144_v57 = vadd.f32 %v1143_v55, %v1142_v53  ;;  %v1347_v52 = vld [vmem:[%s2264_s7 + $0x8] sm:$0xff]  ;;  %v1346_v53 = vld [vmem:[%s2264_s7] sm:$0xff] }
 0x577   : > { %v1145_v58 = vrot.slane %v1144_v57, 1  ;;  %1820 = vrcp.f32 %v965_v56 }
 0x579   : > { %v1146_v59 = vadd.f32 %v1145_v58, %v1144_v57 }
 0x57b   : > { %1822 = vrcp.f32 %v1146_v59 }
 0x584   : > { %v1821_v60 = vpop.eup %1820 }
 0x585   : > { %v967_v61 = vmul.f32 %v1821_v60, %v1817_v44 }
 0x587   : > { %1677 = vmatmul.mubr.msk.f32.vlgmr.msra.gmra.mxu1 %vm517_vm2, %v967_v61 }
 0x588   : > { %v1823_v63 = vpop.eup %1822  ;;  %1685 = vmatpush3.msra.mxu1 %v1150_v62  ;;  %1686 = vmatprep.mubr.msk.f32.mxu1 %vm1905_vm1, %v1904_v8 }
 0x589   : > { %v1148_v0 = vmul.f32 %v1823_v63, %v1819_v47  ;;  %1700 = vmatprep.subr.mxu1 %v1904_v8 }
 0x58b   : > { %1687 = vmatmul.mubr.msk.f32.vlgmr.msra.gmra.mxu1 %vm517_vm2, %v1148_v0 }
 0x58c   : > { %1732 = vmatprep.mubr.msk.f32.mxu1 %vm1905_vm1, %v1904_v8  ;;  %1701 = vmatpush3.msra.mxu1 %v1361_v30 }
 0x58d   : > { %1702 = vmatprep.subr.mxu1 %v1904_v8 }
 0x58e   : > { %1703 = vmatpush3.msra.mxu1 %v1360_v31 }
 0x58f   : > { %1704 = vmatprep.subr.mxu1 %v1904_v8 }
 0x590   : > { %1705 = vmatpush3.msra.mxu1 %v1359_v32 }
 0x591   : > { %1706 = vmatprep.subr.mxu1 %v1904_v8 }
 0x592   : > { %1707 = vmatpush3.msra.mxu1 %v1358_v33 }
 0x593   : > { %1708 = vmatprep.subr.mxu1 %v1904_v8 }
 0x594   : > { %1709 = vmatpush3.msra.mxu1 %v1357_v34 }
 0x595   : > { %1710 = vmatprep.subr.mxu1 %v1904_v8 }
 0x596   : > { %1711 = vmatpush3.msra.mxu1 %v1356_v35 }
 0x597   : > { %1712 = vmatprep.subr.mxu1 %v1904_v8 }
 0x598   : > { %1713 = vmatpush3.msra.mxu1 %v1355_v36 }
 0x599   : > { %1714 = vmatprep.subr.mxu1 %v1904_v8 }
 0x59a   : > { %1715 = vmatpush3.msra.mxu1 %v1354_v37 }
 0x59b   : > { %1716 = vmatprep.subr.mxu1 %v1904_v8 }
 0x59c   : > { %1717 = vmatpush3.msra.mxu1 %v1353_v38 }
 0x59d   : > { %1718 = vmatprep.subr.mxu1 %v1904_v8 }
 0x59e   : > { %1719 = vmatpush3.msra.mxu1 %v1352_v39 }
 0x59f   : > { %1720 = vmatprep.subr.mxu1 %v1904_v8 }
 0x5a0   : > { %1721 = vmatpush3.msra.mxu1 %v1351_v40 }
 0x5a1   : > { %1722 = vmatprep.subr.mxu1 %v1904_v8 }
 0x5a2   : > { %1723 = vmatpush3.msra.mxu1 %v1350_v41 }
 0x5a3   : > { %1724 = vmatprep.subr.mxu1 %v1904_v8 }
 0x5a4   : > { %1725 = vmatpush3.msra.mxu1 %v1349_v42 }
 0x5a5   : > { %1726 = vmatprep.subr.mxu1 %v1904_v8 }
 0x5a6   : > { %1727 = vmatpush3.msra.mxu1 %v1348_v43 }
 0x5a7   : > { %1728 = vmatprep.subr.mxu1 %v1904_v8 }
 0x5a8   : > { %1729 = vmatpush3.msra.mxu1 %v1347_v52 }
 0x5a9   : > { %1730 = vmatprep.subr.mxu1 %v1904_v8 }
 0x5aa   : > { %1731 = vmatpush3.msra.mxu1 %v1346_v53 }
 0x5b9   : > { %v866_v2 = vpop.permute.xlu0 %865 }
 0x5ba   : > { %v868_v3 = vadd.f32 %v866_v2, %v863_v1 }
 0x5bc   : > { %870 = vst.msk [vmem:[#allocation2] sm:$0xff] %vm869_vm3, %v868_v3 }
 0x5c3   : > { %v1044_v9 = vld [vmem:[#allocation2] sm:$0xff] }
 0x647   : > { %v1040_v4 = vpop.f32.mrf.mxu1 }
 0x648   : > { %1046 = vrot.lane.b32.xlu1 %v1040_v4, %s1918_s18  ;;  %s1826_s18 = scalar_lea.vmem %s1454_s27, 128 }
 0x649   : > { %v1678_v5 = vpop.f32.mrf.mxu1  ;;  %p1827_p12 = scmp.ne.s32.totalorder %s1454_s27, %s1826_s18 }
 0x64b   : > { %v1221_v6 = vpop.f32.mrf.mxu1  ;;  %p1828_p13 = pnand %p1827_p12, %p2011_p4 }
 0x64c   : > { %1227 = vrot.lane.b32.xlu0 %v1221_v6, %s1919_s20  ;;  %s1920_s20 = smov [#allocation4]  }
 0x64d   : > { %v1688_v7 = vpop.f32.mrf.mxu1  ;;  %p1829_p0 = pneg %p1828_p13  ;;  %s1830_s0 = sshll.u32 %s1920_s20, 4  ;;  %s1831_s0 = int_to_ptr.vmem [resolvable:$false] %s1830_s0 }
 0x64e   : > { %s1832_s12 = scalar_lea.vmem %s1831_s0, 256  ;;  %p1833_p1 = scmp.lt.s32.totalorder %s1454_s27, %s1831_s0 }
 0x64f   : > { %p1834_p2 = scmp.lt.s32.totalorder %s1832_s12, %s1826_s18 }
 0x651   : > { %p1835_p3 = por %p1834_p2, %p1833_p1 }
 0x653   : > { %p1836_p5 = pnand %p1835_p3, %p1829_p0 }
 0x6ba   : > { %v1047_v10 = vpop.permute.xlu1 %1046 }
 0x6bb   : > { %v1049_v11 = vadd.f32 %v1047_v10, %v1044_v9 }
 0x6bd   : > { %1051 = vst.msk [vmem:[#allocation2] sm:$0xff] %vm1050_vm4, %v1049_v11 }
 0x6be   : > { %v1228_v13 = vpop.permute.xlu0 %1227 }
 0x6c4   : > { %v1225_v12 = vld [vmem:[#allocation2] sm:$0xff] }
 0x6c5   : > { %v1230_v14 = vadd.f32 %v1228_v13, %v1225_v12 }
 0x6c7   : > { %1232 = vst.msk [vmem:[#allocation2] sm:$0xff] %vm1231_vm5, %v1230_v14 }
 0x6ce   : > { %v1233_v17 = vld [vmem:[#allocation2] sm:$0xff] }
 0x6cf   : > { %v1234_v19 = vsel %vm400_vm0, %v1233_v17, 0.0  ;;  %v1257_v20 = vadd.f32 %v1588_v15, %v1233_v17 }
 0x6d0   : > { %1235 = vadd.xlane.f32.xlu1 %v1234_v19 }
 0x6d1   : > { %1258 = vst.msk [vmem:[#allocation2] sm:$0xff] %vm400_vm0, %v1257_v20 }
 0x6d8   : > { %v1345_v56 = vld [vmem:[#allocation2] sm:$0xff] }
 0x759   : > { %v1236_v21 = vpop.xlane.xlu1 %1235 }
 0x75a   : > { %v1237_v22 = vmul.f32 0.03125, %v1236_v21 }
 0x75c   : > { %v1238_v23 = vsub.f32 %v1233_v17, %v1237_v22 }
 0x75e   : > { %v1239_v24 = vmul.f32 %v1238_v23, %v1238_v23 }
 0x760   : > { %v1240_v25 = vsel %vm400_vm0, %v1239_v24, 0.0 }
 0x761   : > { %1241 = vadd.xlane.f32.xlu0 %v1240_v25 }
 0x7ea   : > { %v1242_v44 = vpop.xlane.xlu0 %1241 }
 0x7eb   : > { %v1243_v45 = vmul.f32 0.03125, %v1242_v44 }
 0x7ed   : > { %v1244_v46 = vadd.f32 1e-05, %v1243_v45 }
 0x7ef   : > { %1824 = vrsqrt.f32 %v1244_v46 }
 0x7fc   : > { %v1825_v47 = vpop.eup %1824 }
 0x7fd   : > { %v1246_v48 = vmul.f32 %v1825_v47, %v1238_v23 }
 0x7ff   : > { %v1247_v49 = vmul.f32 %v2059_v16, %v1246_v48  ;;  %v1589_v16 = vld [vmem:[%s2263_s6] ss:$0 sm:$0xff] }
 0x801   : > { %v1248_v50 = vadd.f32 %v2064_v18, %v1247_v49 }
 0x803   : > { %1249 = vst.msk [vmem:[#allocation3] sm:$0xff] %vm400_vm0, %v1248_v50 }
 0x80a   : > { %v1259_v51 = vld [vmem:[#allocation3] sm:$0xff] }
 0x80b   : > { %1698 = vmatmul.mubr.msk.f32.vlgmr.msra.gmra.mxu0 %vm400_vm0, %v1259_v51 }
 0x8cb   : > { %v1341_v18 = vpop.f32.mrf.mxu0 }
 0x8cc   : > { %v1342_v54 = vadd.f32 %v1589_v16, %v1341_v18 }
 0x8cd   : > { %v1699_v55 = vpop.f32.mrf.mxu0 }
 0x8ce   : > { %1733 = vmatmul.mubr.f32.vlgmr.msra.gmra.mxu1 %v1342_v54 }
 0x98e   : > { %v1428_v57 = vpop.f32.mrf.mxu1 }
 0x98f   : > { %v1432_v58 = vadd.f32 %v1428_v57, %v1345_v56 }
 0x990   : > { %v1734_v8 = vpop.f32.mrf.mxu1 }
 0x991   : > { %1433 = vst.msk [vmem:[#allocation2] sm:$0xff] %vm400_vm0, %v1432_v58 }
 0x998   : > { %v1437_v59 = vld [vmem:[#allocation2] sm:$0xff] }
 0x999   : > { %1438 = vst.msk [vmem:[%s375_s26] sm:$0xff] %vm400_vm0, %v1437_v59 }
 0x99a   : > { %1839 = shalt.err (!%p1836_p5)
}
 0x99b   : > { %s1840_s24 = scalar_lea.hbm %s2216_s15, 128  ;;  %s1844_s26 = scalar_lea.hbm %s2266_s9, 256 }
 0x99c   : > { %p1841_p6 = scmp.ne.s32.totalorder %s2216_s15, %s1840_s24  ;;  %p1845_p10 = scmp.lt.s32.totalorder %s2216_s15, %s2266_s9 }
 0x99d   : > { %p1846_p11 = scmp.lt.s32.totalorder %s1844_s26, %s1840_s24 }
 0x99e   : > { %p1842_p7 = pnand %p1841_p6, %p2011_p4 }
 0x99f   : > { %p1847_p12 = por %p1846_p11, %p1845_p10 }
 0x9a0   : > { %p1843_p9 = pneg %p1842_p7 }
 0x9a2   : > { %p1848_p13 = pnand %p1847_p12, %p1843_p9 }
 0x9a4   : > { %1851 = shalt.err (!%p1848_p13)
}
 0x9a5   : > { %1735 = dma.vmem_to_hbm [thread:$0]  (%p2011_p4), %s1454_s27, 128, %s2216_s15, %s1440_s16  }
 0x9a6 PF: > { %p1741_p0 = scmp.ge.s32.totalorder %s1902_s14, 2  ;;  %s1465_s0 = sand.u32 1, %s1882_s30  }
 0x9a7   : > { %s1466_s18 = scalar_lea.sflag [#allocation5], %s1465_s0 }
 0x9a8   : > { %p1738_p1 = pnand %p1741_p0, %p2018_p8 }
 0x9aa   : > { %p1739_p2 = pneg %p1738_p1 }
 0x9ac   : > { %1877 = dma.done.wait (%p1739_p2), %s1466_s18, 128  }
 0x9ad   : > { %1879 = vsyncadd (%p1739_p2), %s1466_s18, 4294967168  ;;  %s22_s14 = sadd.s32 1, %s1902_s14   ;;  %s2271_s30 = smov %s1886_s10 }
 0x9ae   : > { %p19_p3 = scmp.ge.s32.totalorder %s22_s14, 4   ;;  %s2272_s10 = smov %s1890_s11 }
 0x9af   : > { %s2273_s11 = smov %s2024_s22  ;;  %s2274_s12 = smov %s1898_s13 }
 0x9b0   : > { %s2275_s13 = smov %s2277_s17  ;;  %21 = sbr.rel (!%p19_p3) target bundleno = 6 (0x6), region = 108 }
 0x9b5   :  { %1471 = vsyncpa [#allocation5], 1 }
 0x9b6   :  { %1473 = vsyncpa [#allocation5 + $0x1], 1 }

</bundles_post_ra>
